<compile_context>
chip_gen: v7x
topology: tpu7x:2x2x1
jax: 0.10.0
libtpu: 0.0.40
codegen_flags: <defaults>
</compile_context>

<pallas_src>
from functools import partial

import jax
import jax.numpy as jnp
from jax.experimental import pallas as pl
from jax.experimental.pallas import tpu as pltpu

_LANE = 128


def _round_up(n, m):
    return (n + m - 1) // m * m


def _pad_last(a, target):
    c = a.shape[-1]
    if c == target:
        return a
    pad = [(0, 0)] * (a.ndim - 1) + [(0, target - c)]
    return jnp.pad(a, pad)


def _vmem_capacity_bytes():
    """Per-core VMEM capacity, with a conservative fallback (v7x: 64 MiB/TC)."""
    try:
        info = pltpu.get_tpu_info()
        cap = int(getattr(info, "vmem_capacity_bytes", 0) or 0)
        if cap > 0:
            return cap
    except Exception:
        pass
    return 64 * 1024 * 1024


def _step_vmem_bytes(tile_h, W, cin_p, cmid_p, cout_p):
    """Rough per-grid-step VMEM working set: double-buffered IO + weights +
    width-unrolled staging scratch + matmul temporaries."""
    bf = 2
    mrows = tile_h + 2
    io = (2 * tile_h * W * cin_p * bf            # input row tile (dbl buffered)
          + 2 * 2 * (2 * W * cin_p * bf)         # top/bottom 2-row halos
          + 2 * tile_h * W * cout_p * bf)        # bf16 output tile (dbl buffered)
    wts = 2 * 9 * (cin_p * cmid_p + cmid_p * cout_p) * bf   # dbl-buffered weights
    scr = (tile_h + 4) * W * 3 * cin_p * bf + mrows * W * 3 * cmid_p * bf
    tmp = (mrows * W * cmid_p * 4                # conv1 f32 accumulator
           + mrows * W * cmid_p * bf             # bf16 mid value
           + tile_h * W * cout_p * 4             # conv2 f32 accumulator
           + mrows * W * 3 * cin_p * bf          # headroom: one lhs materialization
           + tile_h * W * 3 * cmid_p * bf)
    return io + wts + scr + tmp


def _pick_tile_h(H, W, cin_p, cmid_p, cout_p, budget_bytes, min_tiles=1):
    """Largest row-tile height (even divisor of H, or H itself) whose per-step
    working set fits the chip-derived budget; prefer >= min_tiles grid steps."""
    cands = sorted(d for d in range(2, H + 1)
                   if H % d == 0 and (d % 2 == 0 or d == H))
    if not cands:
        return H
    pref = [d for d in cands if H // d >= min_tiles] or cands
    best = pref[0]
    for d in pref:
        if _step_vmem_bytes(d, W, cin_p, cmid_p, cout_p) <= budget_bytes:
            best = d
    return best


def _double_conv_kernel(xc_ref, xt_ref, xb_ref,
                        w1_ref, b1_ref, w2_ref, b2_ref,
                        o_ref, v1_ref, v2_ref):
    # xc_ref: (tile_h, W, Cin_p)     bf16 current input row tile
    # xt_ref: (2, W, Cin_p)          bf16 two rows above the tile (ignored at t == 0)
    # xb_ref: (2, W, Cin_p)          bf16 two rows below the tile (ignored at t == nt-1)
    # w1_ref: (9*Cin_p, Cmid_p)      bf16 conv1 weights * BN1 scale, rows = (ky, kx, ci)
    # b1_ref: (1, Cmid_p)            f32 folded BN1 bias
    # w2_ref: (9*Cmid_p, Cout_p)     bf16 conv2 weights * BN2 scale
    # b2_ref: (1, Cout_p)            f32 folded BN2 bias
    # o_ref:  (tile_h, W, Cout_p)    bf16 output row tile
    # v1_ref: (tile_h+4, W, 3*Cin_p) scratch: width-unrolled input (+ 2-row halos)
    # v2_ref: (tile_h+2, W, 3*Cmid_p)scratch: width-unrolled mid activation
    tile_h, W, cout_p = o_ref.shape
    cin_p = xc_ref.shape[-1]
    cmid_p = v2_ref.shape[-1] // 3
    mrows = tile_h + 2
    k1 = 3 * cin_p
    k2 = 3 * cmid_p

    t = pl.program_id(1)
    nt = pl.num_programs(1)

    def stage3(dst, src, r0):
        # Width-unroll: dst[r, c, dx*C:(dx+1)*C] = SAME-padded src[r, c+dx-1].
        n, w, c = src.shape
        zcol = jnp.zeros((n, 1, c), dst.dtype)
        s = src.astype(dst.dtype)
        dst[r0:r0 + n, :, c:2 * c] = s                         # dx = 1 (aligned copy)
        dst[r0:r0 + n, 0:1, 0:c] = zcol                        # dx = 0, left SAME pad
        dst[r0:r0 + n, 1:w, 0:c] = s[:, 0:w - 1, :]            # dx = 0
        dst[r0:r0 + n, 0:w - 1, 2 * c:3 * c] = s[:, 1:w, :]    # dx = 2
        dst[r0:r0 + n, w - 1:w, 2 * c:3 * c] = zcol            # dx = 2, right SAME pad

    # ---- stage the width-unrolled input: tile rows + 2-row halo on each side ----
    stage3(v1_ref, xc_ref[...], 2)

    @pl.when(t > 0)                                  # rows above exist -> real data
    def _():
        stage3(v1_ref, xt_ref[...], 0)

    @pl.when(t == 0)                                 # image top -> SAME padding
    def _():
        v1_ref[0:2, :, :] = jnp.zeros((2,) + v1_ref.shape[1:], v1_ref.dtype)

    @pl.when(t < nt - 1)                             # rows below exist -> real data
    def _():
        stage3(v1_ref, xb_ref[...], tile_h + 2)

    @pl.when(t == nt - 1)                            # image bottom -> SAME padding
    def _():
        v1_ref[tile_h + 2:tile_h + 4, :, :] = jnp.zeros(
            (2,) + v1_ref.shape[1:], v1_ref.dtype)

    # ---- conv1: 3 MXU matmuls (K = 3*Cin_p) over row-shifted contiguous views ---
    def lhs1(dy):
        return v1_ref[dy:dy + mrows, :, :].reshape(mrows * W, k1)

    acc1 = jnp.dot(lhs1(0), w1_ref[0:k1, :], preferred_element_type=jnp.float32)
    acc1 = acc1 + jnp.dot(lhs1(1), w1_ref[k1:2 * k1, :],
                          preferred_element_type=jnp.float32)
    acc1 = acc1 + jnp.dot(lhs1(2), w1_ref[2 * k1:3 * k1, :],
                          preferred_element_type=jnp.float32)
    mid = jnp.maximum(acc1 + b1_ref[...], 0.0)       # folded BN1 bias + ReLU (f32)
    mid3 = mid.reshape(mrows, W, cmid_p).astype(v2_ref.dtype)

    # ---- stage the width-unrolled mid activation --------------------------------
    stage3(v2_ref, mid3, 0)

    # Mid rows outside the image are conv2's SAME padding -> true zeros (not
    # conv1-of-zero-padding values).
    @pl.when(t == 0)
    def _():
        v2_ref[0:1, :, :] = jnp.zeros((1,) + v2_ref.shape[1:], v2_ref.dtype)

    @pl.when(t == nt - 1)
    def _():
        v2_ref[mrows - 1:mrows, :, :] = jnp.zeros((1,) + v2_ref.shape[1:],
                                                  v2_ref.dtype)

    # ---- conv2: 3 MXU matmuls (K = 3*Cmid_p) -------------------------------------
    def lhs2(dy):
        return v2_ref[dy:dy + tile_h, :, :].reshape(tile_h * W, k2)

    acc2 = jnp.dot(lhs2(0), w2_ref[0:k2, :], preferred_element_type=jnp.float32)
    acc2 = acc2 + jnp.dot(lhs2(1), w2_ref[k2:2 * k2, :],
                          preferred_element_type=jnp.float32)
    acc2 = acc2 + jnp.dot(lhs2(2), w2_ref[2 * k2:3 * k2, :],
                          preferred_element_type=jnp.float32)
    y = jnp.maximum(acc2 + b2_ref[...], 0.0)         # folded BN2 bias + ReLU (f32)
    o_ref[...] = y.reshape(tile_h, W, cout_p).astype(o_ref.dtype)


def fused_double_conv_nhwc(x_nhwc, w1, scale1, bias1, w2, scale2, bias2,
                           *, tile_h=None):
    """(conv3x3 -> folded-BN -> ReLU) x 2 on an NHWC input, as one pallas_call.
    Returns a bf16 NHWC tensor with the true Cout channels."""
    B, H, W, Cin = x_nhwc.shape
    Cmid = w1.shape[-1]
    Cout = w2.shape[-1]
    assert w1.shape[:3] == (3, 3, Cin) and w2.shape[:3] == (3, 3, Cmid)
    assert H >= 2 and W >= 2, "spatial dims must be >= 2"

    cin_p = _round_up(Cin, _LANE)
    cmid_p = _round_up(Cmid, _LANE)
    cout_p = _round_up(Cout, _LANE)

    cap = _vmem_capacity_bytes()
    if tile_h is None:
        tile_h = _pick_tile_h(H, W, cin_p, cmid_p, cout_p,
                              budget_bytes=int(0.5 * cap),
                              min_tiles=2 if B < 2 else 1)
    assert H % tile_h == 0, "tile_h must divide H"
    assert tile_h == H or tile_h % 2 == 0, "row tiles must have even height"
    nt = H // tile_h
    half = tile_h // 2  # the 2-row halo operands are addressed in 2-row blocks

    # Lane-dense channel padding (zeros) + bf16 for the MXU; padded channels are
    # exact zeros end-to-end and get sliced off below.
    # TODO(synk): small-Cin stems (Cin=1..3) would be cheaper with taps packed into
    # the lane axis before padding to 128 instead of padding Cin directly.
    x_in = _pad_last(x_nhwc, cin_p).astype(jnp.bfloat16)

    def prep_w(w, scale, cin_pad, cout_pad):
        # Fold the BN scale into the (bias-free) conv weights, pad channels to the
        # lane width, and lay out as (9*Cin_pad, Cout_pad) with rows = (ky, kx, ci).
        w = w.astype(jnp.float32) * scale.astype(jnp.float32).reshape(1, 1, 1, -1)
        w = _pad_last(w, cout_pad)
        if w.shape[2] != cin_pad:
            w = jnp.pad(w, ((0, 0), (0, 0), (0, cin_pad - w.shape[2]), (0, 0)))
        return w.reshape(9 * cin_pad, cout_pad).astype(jnp.bfloat16)

    def prep_b(b, cpad):
        return _pad_last(b.astype(jnp.float32).reshape(1, -1), cpad)

    w1p = prep_w(w1, scale1, cin_p, cmid_p)
    w2p = prep_w(w2, scale2, cmid_p, cout_p)
    b1p = prep_b(bias1, cmid_p)
    b2p = prep_b(bias2, cout_p)

    def cur_map(b, t):
        return (b, t, 0, 0)

    def top_map(b, t):
        # two rows directly above the tile; clamped at t == 0 (content ignored)
        return (b, jnp.maximum(t * half - 1, 0), 0, 0)

    def bot_map(b, t):
        # two rows directly below the tile; clamped at t == nt-1 (content ignored)
        return (b, jnp.minimum((t + 1) * half, H // 2 - 1), 0, 0)

    const2 = lambda b, t: (0, 0)

    vmem_limit = min(int(0.9 * cap),
                     max(32 * 1024 * 1024,
                         int(1.5 * _step_vmem_bytes(tile_h, W, cin_p, cmid_p,
                                                    cout_p))))

    out = pl.pallas_call(
        _double_conv_kernel,
        out_shape=jax.ShapeDtypeStruct((B, H, W, cout_p), jnp.bfloat16),
        grid_spec=pltpu.PrefetchScalarGridSpec(
            num_scalar_prefetch=0,
            grid=(B, nt),
            in_specs=[
                pl.BlockSpec((None, tile_h, W, cin_p), cur_map),
                pl.BlockSpec((None, 2, W, cin_p), top_map),
                pl.BlockSpec((None, 2, W, cin_p), bot_map),
                pl.BlockSpec((9 * cin_p, cmid_p), const2),
                pl.BlockSpec((1, cmid_p), const2),
                pl.BlockSpec((9 * cmid_p, cout_p), const2),
                pl.BlockSpec((1, cout_p), const2),
            ],
            out_specs=pl.BlockSpec((None, tile_h, W, cout_p), cur_map),
            scratch_shapes=[
                pltpu.VMEM((tile_h + 4, W, 3 * cin_p), jnp.bfloat16),
                pltpu.VMEM((tile_h + 2, W, 3 * cmid_p), jnp.bfloat16),
            ],
        ),
        compiler_params=pltpu.CompilerParams(
            dimension_semantics=("parallel", "parallel"),
            vmem_limit_bytes=vmem_limit),
    )(x_in, x_in, x_in, w1p, b1p, w2p, b2p)

    if cout_p != Cout:
        out = out[..., :Cout]
    return out


def fold_bn(gamma, beta, running_mean, running_var, eps=1e-5):
    scale = gamma / jnp.sqrt(running_var + eps)
    bias = beta - running_mean * scale
    return scale, bias


def init_params(key, in_channels, out_channels, mid_channels=None):
    if not mid_channels:
        mid_channels = out_channels
    k = jax.random.split(key, 10)

    def conv_w(kk, cin, cout):
        fan_in = cin * 9
        bound = (1.0 / fan_in) ** 0.5
        return jax.random.uniform(kk, (3, 3, cin, cout), jnp.float32, -bound, bound)

    def bn_params(keys, c):
        kg, kb, km, kv = keys
        gamma = 1.0 + 0.1 * jax.random.normal(kg, (c,), jnp.float32)
        beta = 0.1 * jax.random.normal(kb, (c,), jnp.float32)
        mean = 0.05 * jax.random.normal(km, (c,), jnp.float32)
        var = 1.0 + 0.1 * jax.random.uniform(kv, (c,), jnp.float32)
        return fold_bn(gamma, beta, mean, var)

    w1 = conv_w(k[0], in_channels, mid_channels)
    s1, b1 = bn_params(k[1:5], mid_channels)
    w2 = conv_w(k[5], mid_channels, out_channels)
    s2, b2 = bn_params(k[6:10], out_channels)
    return dict(w1=w1, scale1=s1, bias1=b1, w2=w2, scale2=s2, bias2=b2)


@partial(jax.jit, static_argnames=("tile_h",))
def double_conv(x_nchw, params, tile_h=None):
    """DoubleConv forward.  Input/output in PyTorch NCHW layout; the layout
    conversion, Cout slice and f32 cast happen once at entry/exit (keep the
    surrounding model NHWC/bf16 to drop them entirely)."""
    x = jnp.transpose(x_nchw, (0, 2, 3, 1))              # NCHW -> NHWC, once
    y = fused_double_conv_nhwc(
        x, params["w1"], params["scale1"], params["bias1"],
        params["w2"], params["scale2"], params["bias2"], tile_h=tile_h)
    return jnp.transpose(y, (0, 3, 1, 2)).astype(x_nchw.dtype)   # NHWC -> NCHW


def _ref_double_conv(x_nchw, params):
    """Pure-JAX reference (lax conv).  Mirrors the kernel's bf16 quantization of
    inputs / folded weights / mid activation / output so the comparison isolates
    structural correctness (conv, SAME padding, folded BN, ReLU, fusion, tiling)."""
    f32 = jnp.float32
    q = lambda a: a.astype(jnp.bfloat16).astype(f32)
    x = q(jnp.transpose(x_nchw, (0, 2, 3, 1)))

    def block(x, w, s, b):
        wf = q(w.astype(f32) * s.astype(f32).reshape(1, 1, 1, -1))  # folded BN scale
        y = jax.lax.conv_general_dilated(
            x, wf, window_strides=(1, 1), padding="SAME",
            dimension_numbers=("NHWC", "HWIO", "NHWC"),
            preferred_element_type=f32,
            precision=jax.lax.Precision.HIGHEST)
        return jnp.maximum(y + b.reshape(1, 1, 1, -1), 0.0)

    y = q(block(x, params["w1"], params["scale1"], params["bias1"]))
    y = q(block(y, params["w2"], params["scale2"], params["bias2"]))
    return jnp.transpose(y, (0, 3, 1, 2))


if __name__ == "__main__":
    B, Cin, Cout, H, W = 2, 4, 8, 16, 16
    key = jax.random.PRNGKey(0)
    k_x, k_p = jax.random.split(key)

    x = jax.random.normal(k_x, (B, Cin, H, W), jnp.float32)   # NCHW like PyTorch
    params = init_params(k_p, Cin, Cout)

    ref = _ref_double_conv(x, params)

    # Row-tiled path: tile_h=4 -> 4 row tiles per image (first / middle / last halos).
    out = jax.block_until_ready(double_conv(x, params, tile_h=4))
    assert out.shape == (B, Cout, H, W), out.shape
    assert jnp.allclose(out, ref, atol=1e-2, rtol=1e-2), \
        float(jnp.max(jnp.abs(out - ref)))

    # Auto-tiled path (chip-VMEM-derived tile; whole-image row tile at this size).
    out2 = jax.block_until_ready(double_conv(x, params))
    assert jnp.allclose(out2, ref, atol=1e-2, rtol=1e-2), \
        float(jnp.max(jnp.abs(out2 - ref)))

    print("KERNEL_OK")
</pallas_src>

<mosaic_0001>
module attributes {stable_mosaic.version = 11 : i64} {
  func.func @_double_conv_kernel(%arg0: i32, %arg1: i32, %arg2: memref<1x4x16x128xbf16, #tpu.memory_space<vmem>>, %arg3: memref<1x2x16x128xbf16, #tpu.memory_space<vmem>>, %arg4: memref<1x2x16x128xbf16, #tpu.memory_space<vmem>>, %arg5: memref<1152x128xbf16, #tpu.memory_space<vmem>>, %arg6: memref<1x128xf32, #tpu.memory_space<vmem>>, %arg7: memref<1152x128xbf16, #tpu.memory_space<vmem>>, %arg8: memref<1x128xf32, #tpu.memory_space<vmem>>, %arg9: memref<1x4x16x128xbf16, #tpu.memory_space<vmem>>, %arg10: memref<8x16x384xbf16, #tpu.memory_space<vmem>>, %arg11: memref<6x16x384xbf16, #tpu.memory_space<vmem>>) attributes {dimension_semantics = [#tpu.dimension_semantics<parallel>, #tpu.dimension_semantics<parallel>], iteration_bounds = array<i64: 2, 4>, scalar_prefetch = 0 : i64, scratch_operands = 2 : i64, tpu.core_type = #tpu.core_type<tc>, window_params = [{transform_indices = @transform_0, window_bounds = array<i64: 1, 4, 16, 128>}, {transform_indices = @transform_1, window_bounds = array<i64: 1, 2, 16, 128>}, {transform_indices = @transform_2, window_bounds = array<i64: 1, 2, 16, 128>}, {pipeline_mode = #tpu.pipeline_mode<synchronous>, transform_indices = @transform_3, window_bounds = array<i64: 1152, 128>}, {pipeline_mode = #tpu.pipeline_mode<synchronous>, transform_indices = @transform_4, window_bounds = array<i64: 1, 128>}, {pipeline_mode = #tpu.pipeline_mode<synchronous>, transform_indices = @transform_5, window_bounds = array<i64: 1152, 128>}, {pipeline_mode = #tpu.pipeline_mode<synchronous>, transform_indices = @transform_6, window_bounds = array<i64: 1, 128>}, {transform_indices = @transform_7, window_bounds = array<i64: 1, 4, 16, 128>}]} {
    %c0 = arith.constant 0 : index
    %c0_0 = arith.constant 0 : index
    %c0_1 = arith.constant 0 : index
    %c0_2 = arith.constant 0 : index
    %0 = vector.load %arg2[%c0, %c0_0, %c0_1, %c0_2] : memref<1x4x16x128xbf16, #tpu.memory_space<vmem>>, vector<1x4x16x128xbf16>
    %1 = vector.shape_cast %0 : vector<1x4x16x128xbf16> to vector<4x16x128xbf16>
    %cst = arith.constant 0.000000e+00 : bf16
    %2 = vector.broadcast %cst : bf16 to vector<4x1x128xbf16>
    %c2 = arith.constant 2 : index
    %c0_3 = arith.constant 0 : index
    %c128 = arith.constant 128 : index
    %3 = vector.load %arg10[%c2, %c0_3, %c128] : memref<8x16x384xbf16, #tpu.memory_space<vmem>>, vector<4x16x128xbf16>
    tpu.vector_store %arg10[%c2, %c0_3, %c128], %1 {strides = array<i32>} : memref<8x16x384xbf16, #tpu.memory_space<vmem>>, vector<4x16x128xbf16>,
    %c2_4 = arith.constant 2 : index
    %c0_5 = arith.constant 0 : index
    %c0_6 = arith.constant 0 : index
    %4 = vector.load %arg10[%c2_4, %c0_5, %c0_6] : memref<8x16x384xbf16, #tpu.memory_space<vmem>>, vector<4x1x128xbf16>
    tpu.vector_store %arg10[%c2_4, %c0_5, %c0_6], %2 {strides = array<i32>} : memref<8x16x384xbf16, #tpu.memory_space<vmem>>, vector<4x1x128xbf16>,
    %5 = vector.extract_strided_slice %1 {offsets = [0, 0, 0], sizes = [4, 15, 128], strides = [1, 1, 1]} : vector<4x16x128xbf16> to vector<4x15x128xbf16>
    %c2_7 = arith.constant 2 : index
    %c1 = arith.constant 1 : index
    %c0_8 = arith.constant 0 : index
    %6 = vector.load %arg10[%c2_7, %c1, %c0_8] : memref<8x16x384xbf16, #tpu.memory_space<vmem>>, vector<4x15x128xbf16>
    tpu.vector_store %arg10[%c2_7, %c1, %c0_8], %5 {strides = array<i32>} : memref<8x16x384xbf16, #tpu.memory_space<vmem>>, vector<4x15x128xbf16>,
    %7 = vector.extract_strided_slice %1 {offsets = [0, 1, 0], sizes = [4, 15, 128], strides = [1, 1, 1]} : vector<4x16x128xbf16> to vector<4x15x128xbf16>
    %c2_9 = arith.constant 2 : index
    %c0_10 = arith.constant 0 : index
    %c256 = arith.constant 256 : index
    %8 = vector.load %arg10[%c2_9, %c0_10, %c256] : memref<8x16x384xbf16, #tpu.memory_space<vmem>>, vector<4x15x128xbf16>
    tpu.vector_store %arg10[%c2_9, %c0_10, %c256], %7 {strides = array<i32>} : memref<8x16x384xbf16, #tpu.memory_space<vmem>>, vector<4x15x128xbf16>,
    %c2_11 = arith.constant 2 : index
    %c15 = arith.constant 15 : index
    %c256_12 = arith.constant 256 : index
    %9 = vector.load %arg10[%c2_11, %c15, %c256_12] : memref<8x16x384xbf16, #tpu.memory_space<vmem>>, vector<4x1x128xbf16>
    tpu.vector_store %arg10[%c2_11, %c15, %c256_12], %2 {strides = array<i32>} : memref<8x16x384xbf16, #tpu.memory_space<vmem>>, vector<4x1x128xbf16>,
    %c0_i32 = arith.constant 0 : i32
    %10 = arith.cmpi sgt, %arg1, %c0_i32 : i32
    %11 = arith.extui %10 : i1 to i32
    %c0_i32_13 = arith.constant 0 : i32
    %12 = arith.cmpi ne, %11, %c0_i32_13 : i32
    scf.if %12 {
      %c0_83 = arith.constant 0 : index
      %c0_84 = arith.constant 0 : index
      %c0_85 = arith.constant 0 : index
      %c0_86 = arith.constant 0 : index
      %81 = vector.load %arg3[%c0_83, %c0_84, %c0_85, %c0_86] : memref<1x2x16x128xbf16, #tpu.memory_space<vmem>>, vector<1x2x16x128xbf16>
      %82 = vector.shape_cast %81 : vector<1x2x16x128xbf16> to vector<2x16x128xbf16>
      %cst_87 = arith.constant 0.000000e+00 : bf16
      %83 = vector.broadcast %cst_87 : bf16 to vector<2x1x128xbf16>
      %c0_88 = arith.constant 0 : index
      %c0_89 = arith.constant 0 : index
      %c128_90 = arith.constant 128 : index
      %84 = vector.load %arg10[%c0_88, %c0_89, %c128_90] : memref<8x16x384xbf16, #tpu.memory_space<vmem>>, vector<2x16x128xbf16>
      tpu.vector_store %arg10[%c0_88, %c0_89, %c128_90], %82 {strides = array<i32>} : memref<8x16x384xbf16, #tpu.memory_space<vmem>>, vector<2x16x128xbf16>,
      %c0_91 = arith.constant 0 : index
      %c0_92 = arith.constant 0 : index
      %c0_93 = arith.constant 0 : index
      %85 = vector.load %arg10[%c0_91, %c0_92, %c0_93] : memref<8x16x384xbf16, #tpu.memory_space<vmem>>, vector<2x1x128xbf16>
      tpu.vector_store %arg10[%c0_91, %c0_92, %c0_93], %83 {strides = array<i32>} : memref<8x16x384xbf16, #tpu.memory_space<vmem>>, vector<2x1x128xbf16>,
      %86 = vector.extract_strided_slice %82 {offsets = [0, 0, 0], sizes = [2, 15, 128], strides = [1, 1, 1]} : vector<2x16x128xbf16> to vector<2x15x128xbf16>
      %c0_94 = arith.constant 0 : index
      %c1_95 = arith.constant 1 : index
      %c0_96 = arith.constant 0 : index
      %87 = vector.load %arg10[%c0_94, %c1_95, %c0_96] : memref<8x16x384xbf16, #tpu.memory_space<vmem>>, vector<2x15x128xbf16>
      tpu.vector_store %arg10[%c0_94, %c1_95, %c0_96], %86 {strides = array<i32>} : memref<8x16x384xbf16, #tpu.memory_space<vmem>>, vector<2x15x128xbf16>,
      %88 = vector.extract_strided_slice %82 {offsets = [0, 1, 0], sizes = [2, 15, 128], strides = [1, 1, 1]} : vector<2x16x128xbf16> to vector<2x15x128xbf16>
      %c0_97 = arith.constant 0 : index
      %c0_98 = arith.constant 0 : index
      %c256_99 = arith.constant 256 : index
      %89 = vector.load %arg10[%c0_97, %c0_98, %c256_99] : memref<8x16x384xbf16, #tpu.memory_space<vmem>>, vector<2x15x128xbf16>
      tpu.vector_store %arg10[%c0_97, %c0_98, %c256_99], %88 {strides = array<i32>} : memref<8x16x384xbf16, #tpu.memory_space<vmem>>, vector<2x15x128xbf16>,
      %c0_100 = arith.constant 0 : index
      %c15_101 = arith.constant 15 : index
      %c256_102 = arith.constant 256 : index
      %90 = vector.load %arg10[%c0_100, %c15_101, %c256_102] : memref<8x16x384xbf16, #tpu.memory_space<vmem>>, vector<2x1x128xbf16>
      tpu.vector_store %arg10[%c0_100, %c15_101, %c256_102], %83 {strides = array<i32>} : memref<8x16x384xbf16, #tpu.memory_space<vmem>>, vector<2x1x128xbf16>,
    } else {
    }
    %c0_i32_14 = arith.constant 0 : i32
    %13 = arith.cmpi eq, %arg1, %c0_i32_14 : i32
    %14 = arith.extui %13 : i1 to i32
    %c0_i32_15 = arith.constant 0 : i32
    %15 = arith.cmpi ne, %14, %c0_i32_15 : i32
    scf.if %15 {
      %cst_83 = arith.constant 0.000000e+00 : bf16
      %81 = vector.broadcast %cst_83 : bf16 to vector<2x16x384xbf16>
      %c0_84 = arith.constant 0 : index
      %c0_85 = arith.constant 0 : index
      %c0_86 = arith.constant 0 : index
      %82 = vector.load %arg10[%c0_84, %c0_85, %c0_86] : memref<8x16x384xbf16, #tpu.memory_space<vmem>>, vector<2x16x384xbf16>
      tpu.vector_store %arg10[%c0_84, %c0_85, %c0_86], %81 {strides = array<i32>} : memref<8x16x384xbf16, #tpu.memory_space<vmem>>, vector<2x16x384xbf16>,
    } else {
    }
    %c3_i32 = arith.constant 3 : i32
    %16 = arith.cmpi slt, %arg1, %c3_i32 : i32
    %17 = arith.extui %16 : i1 to i32
    %c0_i32_16 = arith.constant 0 : i32
    %18 = arith.cmpi ne, %17, %c0_i32_16 : i32
    scf.if %18 {
      %c0_83 = arith.constant 0 : index
      %c0_84 = arith.constant 0 : index
      %c0_85 = arith.constant 0 : index
      %c0_86 = arith.constant 0 : index
      %81 = vector.load %arg4[%c0_83, %c0_84, %c0_85, %c0_86] : memref<1x2x16x128xbf16, #tpu.memory_space<vmem>>, vector<1x2x16x128xbf16>
      %82 = vector.shape_cast %81 : vector<1x2x16x128xbf16> to vector<2x16x128xbf16>
      %cst_87 = arith.constant 0.000000e+00 : bf16
      %83 = vector.broadcast %cst_87 : bf16 to vector<2x1x128xbf16>
      %c6 = arith.constant 6 : index
      %c0_88 = arith.constant 0 : index
      %c128_89 = arith.constant 128 : index
      %84 = vector.load %arg10[%c6, %c0_88, %c128_89] : memref<8x16x384xbf16, #tpu.memory_space<vmem>>, vector<2x16x128xbf16>
      tpu.vector_store %arg10[%c6, %c0_88, %c128_89], %82 {strides = array<i32>} : memref<8x16x384xbf16, #tpu.memory_space<vmem>>, vector<2x16x128xbf16>,
      %c6_90 = arith.constant 6 : index
      %c0_91 = arith.constant 0 : index
      %c0_92 = arith.constant 0 : index
      %85 = vector.load %arg10[%c6_90, %c0_91, %c0_92] : memref<8x16x384xbf16, #tpu.memory_space<vmem>>, vector<2x1x128xbf16>
      tpu.vector_store %arg10[%c6_90, %c0_91, %c0_92], %83 {strides = array<i32>} : memref<8x16x384xbf16, #tpu.memory_space<vmem>>, vector<2x1x128xbf16>,
      %86 = vector.extract_strided_slice %82 {offsets = [0, 0, 0], sizes = [2, 15, 128], strides = [1, 1, 1]} : vector<2x16x128xbf16> to vector<2x15x128xbf16>
      %c6_93 = arith.constant 6 : index
      %c1_94 = arith.constant 1 : index
      %c0_95 = arith.constant 0 : index
      %87 = vector.load %arg10[%c6_93, %c1_94, %c0_95] : memref<8x16x384xbf16, #tpu.memory_space<vmem>>, vector<2x15x128xbf16>
      tpu.vector_store %arg10[%c6_93, %c1_94, %c0_95], %86 {strides = array<i32>} : memref<8x16x384xbf16, #tpu.memory_space<vmem>>, vector<2x15x128xbf16>,
      %88 = vector.extract_strided_slice %82 {offsets = [0, 1, 0], sizes = [2, 15, 128], strides = [1, 1, 1]} : vector<2x16x128xbf16> to vector<2x15x128xbf16>
      %c6_96 = arith.constant 6 : index
      %c0_97 = arith.constant 0 : index
      %c256_98 = arith.constant 256 : index
      %89 = vector.load %arg10[%c6_96, %c0_97, %c256_98] : memref<8x16x384xbf16, #tpu.memory_space<vmem>>, vector<2x15x128xbf16>
      tpu.vector_store %arg10[%c6_96, %c0_97, %c256_98], %88 {strides = array<i32>} : memref<8x16x384xbf16, #tpu.memory_space<vmem>>, vector<2x15x128xbf16>,
      %c6_99 = arith.constant 6 : index
      %c15_100 = arith.constant 15 : index
      %c256_101 = arith.constant 256 : index
      %90 = vector.load %arg10[%c6_99, %c15_100, %c256_101] : memref<8x16x384xbf16, #tpu.memory_space<vmem>>, vector<2x1x128xbf16>
      tpu.vector_store %arg10[%c6_99, %c15_100, %c256_101], %83 {strides = array<i32>} : memref<8x16x384xbf16, #tpu.memory_space<vmem>>, vector<2x1x128xbf16>,
    } else {
    }
    %c3_i32_17 = arith.constant 3 : i32
    %19 = arith.cmpi eq, %arg1, %c3_i32_17 : i32
    %20 = arith.extui %19 : i1 to i32
    %c0_i32_18 = arith.constant 0 : i32
    %21 = arith.cmpi ne, %20, %c0_i32_18 : i32
    scf.if %21 {
      %cst_83 = arith.constant 0.000000e+00 : bf16
      %81 = vector.broadcast %cst_83 : bf16 to vector<2x16x384xbf16>
      %c6 = arith.constant 6 : index
      %c0_84 = arith.constant 0 : index
      %c0_85 = arith.constant 0 : index
      %82 = vector.load %arg10[%c6, %c0_84, %c0_85] : memref<8x16x384xbf16, #tpu.memory_space<vmem>>, vector<2x16x384xbf16>
      tpu.vector_store %arg10[%c6, %c0_84, %c0_85], %81 {strides = array<i32>} : memref<8x16x384xbf16, #tpu.memory_space<vmem>>, vector<2x16x384xbf16>,
    } else {
    }
    %c0_19 = arith.constant 0 : index
    %c0_20 = arith.constant 0 : index
    %c0_21 = arith.constant 0 : index
    %22 = vector.load %arg10[%c0_19, %c0_20, %c0_21] : memref<8x16x384xbf16, #tpu.memory_space<vmem>>, vector<6x16x384xbf16>
    %23 = vector.shape_cast %22 : vector<6x16x384xbf16> to vector<96x384xbf16>
    %c0_22 = arith.constant 0 : index
    %c0_23 = arith.constant 0 : index
    %24 = vector.load %arg5[%c0_22, %c0_23] : memref<1152x128xbf16, #tpu.memory_space<vmem>>, vector<384x128xbf16>
    %cst_24 = arith.constant dense<0.000000e+00> : vector<96x128xf32>
    %25 = tpu.matmul %23, %24, %cst_24 {dimension_numbers = #tpu.dot_dimension_numbers<[1], [0], [0], [1], [0, 0, 1, 1], [], []>} : vector<96x384xbf16>, vector<384x128xbf16>, vector<96x128xf32> -> vector<96x128xf32>
    %c1_25 = arith.constant 1 : index
    %c0_26 = arith.constant 0 : index
    %c0_27 = arith.constant 0 : index
    %26 = vector.load %arg10[%c1_25, %c0_26, %c0_27] : memref<8x16x384xbf16, #tpu.memory_space<vmem>>, vector<6x16x384xbf16>
    %27 = vector.shape_cast %26 : vector<6x16x384xbf16> to vector<96x384xbf16>
    %c384 = arith.constant 384 : index
    %c0_28 = arith.constant 0 : index
    %28 = vector.load %arg5[%c384, %c0_28] : memref<1152x128xbf16, #tpu.memory_space<vmem>>, vector<384x128xbf16>
    %cst_29 = arith.constant dense<0.000000e+00> : vector<96x128xf32>
    %29 = tpu.matmul %27, %28, %cst_29 {dimension_numbers = #tpu.dot_dimension_numbers<[1], [0], [0], [1], [0, 0, 1, 1], [], []>} : vector<96x384xbf16>, vector<384x128xbf16>, vector<96x128xf32> -> vector<96x128xf32>
    %30 = arith.addf %25, %29 : vector<96x128xf32>
    %c2_30 = arith.constant 2 : index
    %c0_31 = arith.constant 0 : index
    %c0_32 = arith.constant 0 : index
    %31 = vector.load %arg10[%c2_30, %c0_31, %c0_32] : memref<8x16x384xbf16, #tpu.memory_space<vmem>>, vector<6x16x384xbf16>
    %32 = vector.shape_cast %31 : vector<6x16x384xbf16> to vector<96x384xbf16>
    %c768 = arith.constant 768 : index
    %c0_33 = arith.constant 0 : index
    %33 = vector.load %arg5[%c768, %c0_33] : memref<1152x128xbf16, #tpu.memory_space<vmem>>, vector<384x128xbf16>
    %cst_34 = arith.constant dense<0.000000e+00> : vector<96x128xf32>
    %34 = tpu.matmul %32, %33, %cst_34 {dimension_numbers = #tpu.dot_dimension_numbers<[1], [0], [0], [1], [0, 0, 1, 1], [], []>} : vector<96x384xbf16>, vector<384x128xbf16>, vector<96x128xf32> -> vector<96x128xf32>
    %35 = arith.addf %30, %34 : vector<96x128xf32>
    %c0_35 = arith.constant 0 : index
    %c0_36 = arith.constant 0 : index
    %36 = vector.load %arg6[%c0_35, %c0_36] : memref<1x128xf32, #tpu.memory_space<vmem>>, vector<1x128xf32>
    %37 = vector.broadcast %36 : vector<1x128xf32> to vector<96x128xf32>
    %38 = arith.addf %35, %37 : vector<96x128xf32>
    %cst_37 = arith.constant 0.000000e+00 : f32
    %39 = vector.broadcast %cst_37 : f32 to vector<96x128xf32>
    %40 = arith.maximumf %38, %39 : vector<96x128xf32>
    %41 = vector.shape_cast %40 : vector<96x128xf32> to vector<6x16x128xf32>
    %42 = arith.truncf %41 : vector<6x16x128xf32> to vector<6x16x128xbf16>
    %cst_38 = arith.constant 0.000000e+00 : bf16
    %43 = vector.broadcast %cst_38 : bf16 to vector<6x1x128xbf16>
    %c0_39 = arith.constant 0 : index
    %c0_40 = arith.constant 0 : index
    %c128_41 = arith.constant 128 : index
    %44 = vector.load %arg11[%c0_39, %c0_40, %c128_41] : memref<6x16x384xbf16, #tpu.memory_space<vmem>>, vector<6x16x128xbf16>
    tpu.vector_store %arg11[%c0_39, %c0_40, %c128_41], %42 {strides = array<i32>} : memref<6x16x384xbf16, #tpu.memory_space<vmem>>, vector<6x16x128xbf16>,
    %c0_42 = arith.constant 0 : index
    %c0_43 = arith.constant 0 : index
    %c0_44 = arith.constant 0 : index
    %45 = vector.load %arg11[%c0_42, %c0_43, %c0_44] : memref<6x16x384xbf16, #tpu.memory_space<vmem>>, vector<6x1x128xbf16>
    tpu.vector_store %arg11[%c0_42, %c0_43, %c0_44], %43 {strides = array<i32>} : memref<6x16x384xbf16, #tpu.memory_space<vmem>>, vector<6x1x128xbf16>,
    %46 = vector.extract_strided_slice %42 {offsets = [0, 0, 0], sizes = [6, 15, 128], strides = [1, 1, 1]} : vector<6x16x128xbf16> to vector<6x15x128xbf16>
    %c0_45 = arith.constant 0 : index
    %c1_46 = arith.constant 1 : index
    %c0_47 = arith.constant 0 : index
    %47 = vector.load %arg11[%c0_45, %c1_46, %c0_47] : memref<6x16x384xbf16, #tpu.memory_space<vmem>>, vector<6x15x128xbf16>
    tpu.vector_store %arg11[%c0_45, %c1_46, %c0_47], %46 {strides = array<i32>} : memref<6x16x384xbf16, #tpu.memory_space<vmem>>, vector<6x15x128xbf16>,
    %48 = vector.extract_strided_slice %42 {offsets = [0, 1, 0], sizes = [6, 15, 128], strides = [1, 1, 1]} : vector<6x16x128xbf16> to vector<6x15x128xbf16>
    %c0_48 = arith.constant 0 : index
    %c0_49 = arith.constant 0 : index
    %c256_50 = arith.constant 256 : index
    %49 = vector.load %arg11[%c0_48, %c0_49, %c256_50] : memref<6x16x384xbf16, #tpu.memory_space<vmem>>, vector<6x15x128xbf16>
    tpu.vector_store %arg11[%c0_48, %c0_49, %c256_50], %48 {strides = array<i32>} : memref<6x16x384xbf16, #tpu.memory_space<vmem>>, vector<6x15x128xbf16>,
    %c0_51 = arith.constant 0 : index
    %c15_52 = arith.constant 15 : index
    %c256_53 = arith.constant 256 : index
    %50 = vector.load %arg11[%c0_51, %c15_52, %c256_53] : memref<6x16x384xbf16, #tpu.memory_space<vmem>>, vector<6x1x128xbf16>
    tpu.vector_store %arg11[%c0_51, %c15_52, %c256_53], %43 {strides = array<i32>} : memref<6x16x384xbf16, #tpu.memory_space<vmem>>, vector<6x1x128xbf16>,
    %c0_i32_54 = arith.constant 0 : i32
    %51 = arith.cmpi eq, %arg1, %c0_i32_54 : i32
    %52 = arith.extui %51 : i1 to i32
    %c0_i32_55 = arith.constant 0 : i32
    %53 = arith.cmpi ne, %52, %c0_i32_55 : i32
    scf.if %53 {
      %cst_83 = arith.constant 0.000000e+00 : bf16
      %81 = vector.broadcast %cst_83 : bf16 to vector<1x16x384xbf16>
      %c0_84 = arith.constant 0 : index
      %c0_85 = arith.constant 0 : index
      %c0_86 = arith.constant 0 : index
      %82 = vector.load %arg11[%c0_84, %c0_85, %c0_86] : memref<6x16x384xbf16, #tpu.memory_space<vmem>>, vector<1x16x384xbf16>
      tpu.vector_store %arg11[%c0_84, %c0_85, %c0_86], %81 {strides = array<i32>} : memref<6x16x384xbf16, #tpu.memory_space<vmem>>, vector<1x16x384xbf16>,
    } else {
    }
    %c3_i32_56 = arith.constant 3 : i32
    %54 = arith.cmpi eq, %arg1, %c3_i32_56 : i32
    %55 = arith.extui %54 : i1 to i32
    %c0_i32_57 = arith.constant 0 : i32
    %56 = arith.cmpi ne, %55, %c0_i32_57 : i32
    scf.if %56 {
      %cst_83 = arith.constant 0.000000e+00 : bf16
      %81 = vector.broadcast %cst_83 : bf16 to vector<1x16x384xbf16>
      %c5 = arith.constant 5 : index
      %c0_84 = arith.constant 0 : index
      %c0_85 = arith.constant 0 : index
      %82 = vector.load %arg11[%c5, %c0_84, %c0_85] : memref<6x16x384xbf16, #tpu.memory_space<vmem>>, vector<1x16x384xbf16>
      tpu.vector_store %arg11[%c5, %c0_84, %c0_85], %81 {strides = array<i32>} : memref<6x16x384xbf16, #tpu.memory_space<vmem>>, vector<1x16x384xbf16>,
    } else {
    }
    %c0_58 = arith.constant 0 : index
    %c0_59 = arith.constant 0 : index
    %c0_60 = arith.constant 0 : index
    %57 = vector.load %arg11[%c0_58, %c0_59, %c0_60] : memref<6x16x384xbf16, #tpu.memory_space<vmem>>, vector<4x16x384xbf16>
    %58 = vector.shape_cast %57 : vector<4x16x384xbf16> to vector<64x384xbf16>
    %c0_61 = arith.constant 0 : index
    %c0_62 = arith.constant 0 : index
    %59 = vector.load %arg7[%c0_61, %c0_62] : memref<1152x128xbf16, #tpu.memory_space<vmem>>, vector<384x128xbf16>
    %cst_63 = arith.constant dense<0.000000e+00> : vector<64x128xf32>
    %60 = tpu.matmul %58, %59, %cst_63 {dimension_numbers = #tpu.dot_dimension_numbers<[1], [0], [0], [1], [0, 0, 1, 1], [], []>} : vector<64x384xbf16>, vector<384x128xbf16>, vector<64x128xf32> -> vector<64x128xf32>
    %c1_64 = arith.constant 1 : index
    %c0_65 = arith.constant 0 : index
    %c0_66 = arith.constant 0 : index
    %61 = vector.load %arg11[%c1_64, %c0_65, %c0_66] : memref<6x16x384xbf16, #tpu.memory_space<vmem>>, vector<4x16x384xbf16>
    %62 = vector.shape_cast %61 : vector<4x16x384xbf16> to vector<64x384xbf16>
    %c384_67 = arith.constant 384 : index
    %c0_68 = arith.constant 0 : index
    %63 = vector.load %arg7[%c384_67, %c0_68] : memref<1152x128xbf16, #tpu.memory_space<vmem>>, vector<384x128xbf16>
    %cst_69 = arith.constant dense<0.000000e+00> : vector<64x128xf32>
    %64 = tpu.matmul %62, %63, %cst_69 {dimension_numbers = #tpu.dot_dimension_numbers<[1], [0], [0], [1], [0, 0, 1, 1], [], []>} : vector<64x384xbf16>, vector<384x128xbf16>, vector<64x128xf32> -> vector<64x128xf32>
    %65 = arith.addf %60, %64 : vector<64x128xf32>
    %c2_70 = arith.constant 2 : index
    %c0_71 = arith.constant 0 : index
    %c0_72 = arith.constant 0 : index
    %66 = vector.load %arg11[%c2_70, %c0_71, %c0_72] : memref<6x16x384xbf16, #tpu.memory_space<vmem>>, vector<4x16x384xbf16>
    %67 = vector.shape_cast %66 : vector<4x16x384xbf16> to vector<64x384xbf16>
    %c768_73 = arith.constant 768 : index
    %c0_74 = arith.constant 0 : index
    %68 = vector.load %arg7[%c768_73, %c0_74] : memref<1152x128xbf16, #tpu.memory_space<vmem>>, vector<384x128xbf16>
    %cst_75 = arith.constant dense<0.000000e+00> : vector<64x128xf32>
    %69 = tpu.matmul %67, %68, %cst_75 {dimension_numbers = #tpu.dot_dimension_numbers<[1], [0], [0], [1], [0, 0, 1, 1], [], []>} : vector<64x384xbf16>, vector<384x128xbf16>, vector<64x128xf32> -> vector<64x128xf32>
    %70 = arith.addf %65, %69 : vector<64x128xf32>
    %c0_76 = arith.constant 0 : index
    %c0_77 = arith.constant 0 : index
    %71 = vector.load %arg8[%c0_76, %c0_77] : memref<1x128xf32, #tpu.memory_space<vmem>>, vector<1x128xf32>
    %72 = vector.broadcast %71 : vector<1x128xf32> to vector<64x128xf32>
    %73 = arith.addf %70, %72 : vector<64x128xf32>
    %cst_78 = arith.constant 0.000000e+00 : f32
    %74 = vector.broadcast %cst_78 : f32 to vector<64x128xf32>
    %75 = arith.maximumf %73, %74 : vector<64x128xf32>
    %76 = vector.shape_cast %75 : vector<64x128xf32> to vector<4x16x128xf32>
    %77 = arith.truncf %76 : vector<4x16x128xf32> to vector<4x16x128xbf16>
    %c0_79 = arith.constant 0 : index
    %c0_80 = arith.constant 0 : index
    %c0_81 = arith.constant 0 : index
    %c0_82 = arith.constant 0 : index
    %78 = vector.load %arg9[%c0_79, %c0_80, %c0_81, %c0_82] : memref<1x4x16x128xbf16, #tpu.memory_space<vmem>>, vector<1x4x16x128xbf16>
    %79 = vector.shape_cast %78 : vector<1x4x16x128xbf16> to vector<4x16x128xbf16>
    %80 = vector.shape_cast %77 : vector<4x16x128xbf16> to vector<1x4x16x128xbf16>
    tpu.vector_store %arg9[%c0_79, %c0_80, %c0_81, %c0_82], %80 {strides = array<i32>} : memref<1x4x16x128xbf16, #tpu.memory_space<vmem>>, vector<1x4x16x128xbf16>,
    return
  }
  func.func @transform_0(%arg0: i32, %arg1: i32) -> (i32, i32, i32, i32) {
    %c0_i32 = arith.constant 0 : i32
    %c0_i32_0 = arith.constant 0 : i32
    %c0_i32_1 = arith.constant 0 : i32
    return %arg0, %arg1, %c0_i32, %c0_i32_0 : i32, i32, i32, i32
  }
  func.func @transform_1(%arg0: i32, %arg1: i32) -> (i32, i32, i32, i32) {
    %c2_i32 = arith.constant 2 : i32
    %0 = arith.muli %arg1, %c2_i32 : i32
    %c1_i32 = arith.constant 1 : i32
    %1 = arith.subi %0, %c1_i32 : i32
    %c0_i32 = arith.constant 0 : i32
    %2 = arith.maxsi %1, %c0_i32 : i32
    %c0_i32_0 = arith.constant 0 : i32
    %c0_i32_1 = arith.constant 0 : i32
    %c0_i32_2 = arith.constant 0 : i32
    return %arg0, %2, %c0_i32_0, %c0_i32_1 : i32, i32, i32, i32
  }
  func.func @transform_2(%arg0: i32, %arg1: i32) -> (i32, i32, i32, i32) {
    %c1_i32 = arith.constant 1 : i32
    %0 = arith.addi %arg1, %c1_i32 : i32
    %c2_i32 = arith.constant 2 : i32
    %1 = arith.muli %0, %c2_i32 : i32
    %c7_i32 = arith.constant 7 : i32
    %2 = arith.minsi %1, %c7_i32 : i32
    %c0_i32 = arith.constant 0 : i32
    %c0_i32_0 = arith.constant 0 : i32
    %c0_i32_1 = arith.constant 0 : i32
    return %arg0, %2, %c0_i32, %c0_i32_0 : i32, i32, i32, i32
  }
  func.func @transform_3(%arg0: i32, %arg1: i32) -> (i32, i32) {
    %c0_i32 = arith.constant 0 : i32
    %c0_i32_0 = arith.constant 0 : i32
    %c0_i32_1 = arith.constant 0 : i32
    return %c0_i32, %c0_i32_0 : i32, i32
  }
  func.func @transform_4(%arg0: i32, %arg1: i32) -> (i32, i32) {
    %c0_i32 = arith.constant 0 : i32
    %c0_i32_0 = arith.constant 0 : i32
    %c0_i32_1 = arith.constant 0 : i32
    return %c0_i32, %c0_i32_0 : i32, i32
  }
  func.func @transform_5(%arg0: i32, %arg1: i32) -> (i32, i32) {
    %c0_i32 = arith.constant 0 : i32
    %c0_i32_0 = arith.constant 0 : i32
    %c0_i32_1 = arith.constant 0 : i32
    return %c0_i32, %c0_i32_0 : i32, i32
  }
  func.func @transform_6(%arg0: i32, %arg1: i32) -> (i32, i32) {
    %c0_i32 = arith.constant 0 : i32
    %c0_i32_0 = arith.constant 0 : i32
    %c0_i32_1 = arith.constant 0 : i32
    return %c0_i32, %c0_i32_0 : i32, i32
  }
  func.func @transform_7(%arg0: i32, %arg1: i32) -> (i32, i32, i32, i32) {
    %c0_i32 = arith.constant 0 : i32
    %c0_i32_0 = arith.constant 0 : i32
    %c0_i32_1 = arith.constant 0 : i32
    return %arg0, %arg1, %c0_i32, %c0_i32_0 : i32, i32, i32, i32
  }
}

</mosaic_0001>

<bundles_post_ra>
// kernel: double_conv.1
= control target key start
LH: loop header
LB: loop body
LE: loop exit
PB: predicated region body
PF: predicated region fallthrough
CT: control target
= control target key end

     0   :  { %s4422_s24 = smov 0   ;;  %s4424_s25 = smov 0   ;;  %s5221_s0 = inlined_call_operand.vmem [shape: bf16[2,16,16,128], index: 0, kind: input, shape index: {}, may-alias: {0,1,2}]   ;;  %s5222_s1 = inlined_call_operand.vmem [shape: bf16[2,16,16,128], index: 1, kind: input, shape index: {}, may-alias: {0,1,2}]   ;;  %s5223_s2 = inlined_call_operand.vmem [shape: bf16[2,16,16,128], index: 2, kind: input, shape index: {}, may-alias: {0,1,2}]   ;;  %s5224_s3 = inlined_call_operand.vmem [shape: bf16[1152,128], index: 3, kind: input, shape index: {}]   ;;  %s5225_s4 = inlined_call_operand.vmem [shape: f32[1,128], index: 4, kind: input, shape index: {}]   ;;  %s5226_s5 = inlined_call_operand.vmem [shape: bf16[1152,128], index: 5, kind: input, shape index: {}]   ;;  %s5227_s6 = inlined_call_operand.vmem [shape: f32[1,128], index: 6, kind: input, shape index: {}]   ;;  %s5228_s7 = inlined_call_operand.vmem [shape: bf16[2,16,16,128], index: 7, kind: output, shape index: {}]  }
   0x1   :  { %s4426_s26 = smov 0   ;;  %s4428_s27 = smov 0  }
   0x2   :  { %s4430_s28 = smov 0  }
   0x3 LB: > { %s26_s29 = sadd.s32 1, %s4368_s26  ;;  %s29_s30 = sadd.s32 1, %s4372_s27  ;;  %s4376_s28 = sphi %s4430_s28, %s17_s28   ;;  %s4372_s27 = sphi %s4428_s27, %s5241_s27   ;;  %s4368_s26 = sphi %s4426_s26, %s5240_s26   ;;  %s4364_s25 = sphi %s4424_s25, %s5239_s25   ;;  %s4360_s24 = sphi %s4422_s24, %s5238_s24  }
   0x4   : > { %p27_p0 = scmp.ge.s32.totalorder %s26_s29, 4  ;;  %p3305_p1 = scmp.ge.s32.totalorder %s4376_s28, 1 }
   0x5   : > { %p327_p2 = scmp.lt.s32.totalorder %s4376_s28, 9 }
   0x6   : > { %s5243_s29 = smov (%p27_p0, %s26_s29), 0  ;;  %s5245_s30 = smov (!%p27_p0, %s29_s30), %s4372_s27 }
   0x7   : > { %p328_p3 = pnand %p3305_p1, %p327_p2  ;;  %p31_p4 = scmp.ge.s32.totalorder %s5245_s30, 2 }
   0x8   : > { %vm495_vm0 = vcmask (!%p328_p3), 1040384   ;;  %vm496_vm1 = vsmask.f32 (!%p328_p3), 256  ;;  %v498_v0 = vld [vmem:[#allocation2 + $0x30] sm:$0x1] (!%p328_p3)  ;;  %s3306_s8 = sshll.u32 (!%p328_p3), %s4360_s24, 2 }
   0x9   : > { %s5247_s30 = smov (%p31_p4, %s5245_s30), 0  ;;  %331 = sbr.rel (%p328_p3) target bundleno = 860 (0x35c), region = 48 }
   0xa   : > { %vm4457_vm2 = vmand (!%p328_p3), %vm495_vm0, %vm496_vm1  ;;  %v501_v2 = vld [vmem:[#allocation2 + $0x48] sm:$0x1] (!%p328_p3)  ;;  %v504_v3 = vld [vmem:[#allocation2 + $0x60] sm:$0x1] (!%p328_p3)  ;;  %p398_p5 = scmp.lt.s32.totalorder (!%p328_p3), %s4364_s25, 1  ;;  %p400_p6 = scmp.lt.s32.totalorder (!%p328_p3), %s3306_s8, 15 }
   0xb   : > { %v499_v4 = vsel (!%p328_p3), %vm4457_vm2, 0, %v498_v0  ;;  %v502_v5 = vsel (!%p328_p3), %vm4457_vm2, 0, %v501_v2  ;;  %v505_v6 = vsel (!%p328_p3), %vm4457_vm2, 0, %v504_v3  ;;  %v507_v7 = vld [vmem:[#allocation2 + $0x78] sm:$0x1] (!%p328_p3)  ;;  %s3310_s9 = sshll.u32 (!%p328_p3), %s4360_s24, 1 }
   0xc   : > { %500 = vst [vmem:[#allocation2 + $0x30] sm:$0x1] (!%p328_p3), %v499_v4  ;;  %503 = vst [vmem:[#allocation2 + $0x48] sm:$0x1] (!%p328_p3), %v502_v5  ;;  %v508_v8 = vsel (!%p328_p3), %vm4457_vm2, 0, %v507_v7  ;;  %s3311_s11 = sadd.s32 (!%p328_p3), 4294967295, %s3310_s9 }
   0xd   : > { %506 = vst [vmem:[#allocation2 + $0x60] sm:$0x1] (!%p328_p3), %v505_v6  ;;  %509 = vst [vmem:[#allocation2 + $0x78] sm:$0x1] (!%p328_p3), %v508_v8  ;;  %p410_p7 = scmp.gt.s32.totalorder (!%p328_p3), %s3311_s11, 0  ;;  %s3500_s14 = sadd.s32 (!%p328_p3), 2, %s3310_s9 }
   0xe   : > { %p429_p8 = scmp.lt.s32.totalorder (!%p328_p3), %s3500_s14, 7  ;;  %vm542_vm3 = vcmask (!%p328_p3), 1047552   ;;  %vm543_vm4 = vsmask.f32 (!%p328_p3), 7938  ;;  %vm569_vm5 = vsmask.f32 (!%p328_p3), 7424 }
   0xf   : > { %v571_v14 = vld [vmem:[#allocation2 + $0x40] sm:$0xff] (!%p328_p3)  ;;  %v574_v19 = vld [vmem:[#allocation2 + $0x58] sm:$0xff] (!%p328_p3)  ;;  %vm4491_vm6 = vmand (!%p328_p3), %vm542_vm3, %vm569_vm5  ;;  %vm583_vm8 = vcmask (!%p328_p3), 1047559   ;;  %vm584_vm9 = vsmask.f32 (!%p328_p3), 7966  ;;  %p3329_p11 = scmp.le.s32.totalorder (!%p328_p3), %s4360_s24, 0 }
  0x10   : > { %s5249_s25 = smov (!%p398_p5, %s4364_s25), 1  ;;  %s5251_s8 = smov (!%p400_p6, %s3306_s8), 15  ;;  %vm4497_vm7 = vmand %vm542_vm3, %vm543_vm4  ;;  %v577_v33 = vld [vmem:[#allocation2 + $0x70] sm:$0xff]  ;;  %v580_v49 = vld [vmem:[#allocation2 + $0x88] sm:$0xff] }
  0x11   : > { %s4472_s10 = sshll.u32 %s5249_s25, 5  ;;  %s3307_s12 = sshll.u32 %s5251_s8, 1  ;;  %vm4529_vm10 = vmand %vm583_vm8, %vm584_vm9  ;;  %v620_v0 = vld [vmem:[#allocation2] sm:$0x1] (!%p3329_p11)  ;;  %v623_v2 = vld [vmem:[#allocation2 + $0x18] sm:$0x1] (!%p3329_p11) }
  0x12   : > { %s404_s13 = sadd.s32 %s4472_s10, %s3307_s12  ;;  %s5253_s11 = smov (!%p410_p7, %s3311_s11), 0  ;;  %v621_v3 = vsel (!%p3329_p11), %vm4457_vm2, 0, %v620_v0  ;;  %v624_v4 = vsel (!%p3329_p11), %vm4457_vm2, 0, %v623_v2 }
  0x13   : > { %s3309_s15 = sshll.u32 %s404_s13, 2  ;;  %s5255_s14 = smov (!%p429_p8, %s3500_s14), 7  ;;  %v545_v26 = vld [vmem:[#allocation2 + $0x30] sm:$0xff]  ;;  %v548_v37 = vld [vmem:[#allocation2 + $0x48] sm:$0xff]  ;;  %622 = vst [vmem:[#allocation2] sm:$0x1] (!%p3329_p11), %v621_v3 }
  0x14   : > { %s406_s18 = scalar_lea.vmem %s5221_s0, %s3309_s15  ;;  %s4481_s21 = scalar_lea.vmem %s5228_s7, %s3309_s15  ;;  %v551_v38 = vld [vmem:[#allocation2 + $0x60] sm:$0xff]  ;;  %v554_v47 = vld [vmem:[#allocation2 + $0x78] sm:$0xff]  ;;  %625 = vst [vmem:[#allocation2 + $0x18] sm:$0x1] (!%p3329_p11), %v624_v4 }
  0x15   : > { %v4186_v9 = vld [vmem:[%s406_s18] sm:$0xff]   ;;  %v4187_v10 = vld [vmem:[%s406_s18 + $0x8] sm:$0xff]   ;;  %s3312_s22 = sshll.u32 %s5253_s11, 1  ;;  %v4188_v13 = vld [vmem:[%s406_s18 + $0x10] sm:$0xff]   ;;  %s3317_s25 = sshll.u32 %s5255_s14, 1 }
  0x16   : > { %v511_v11 = vshrl.u32 %v4186_v9, 16  ;;  %v514_v12 = vshll.u32 %v4186_v9, 16  ;;  %491 = vst [vmem:[#allocation2 + $0x38] sm:$0xff] %v4186_v9  ;;  %p4483_p9 = scmp.lt.s32.totalorder %s3312_s22, 15  ;;  %v518_v15 = vshrl.u32 %v4187_v10, 16  ;;  %v521_v16 = vshll.u32 %v4187_v10, 16 }
  0x17   : > { %492 = vst [vmem:[#allocation2 + $0x50] sm:$0xff] %v4187_v10  ;;  %p434_p10 = scmp.lt.s32.totalorder %s3317_s25, 15  ;;  %v525_v20 = vshrl.u32 %v4188_v13, 16  ;;  %v528_v21 = vshll.u32 %v4188_v13, 16  ;;  %493 = vst [vmem:[#allocation2 + $0x68] sm:$0xff] %v4188_v13  ;;  %v4189_v22 = vld [vmem:[%s406_s18 + $0x18] sm:$0xff]  }
  0x18   : > { %v513_v17 = vrot.slane %v511_v11, 7  ;;  %v557_v18 = vrot.slane %v514_v12, 1  ;;  %s5257_s22 = smov (!%p4483_p9, %s3312_s22), 15  ;;  %v520_v24 = vrot.slane %v518_v15, 7  ;;  %v559_v25 = vrot.slane %v521_v16, 1  ;;  %494 = vst [vmem:[#allocation2 + $0x80] sm:$0xff] %v4189_v22 }
  0x19   : > { %s5259_s25 = smov (!%p434_p10, %s3317_s25), 15  ;;  %v527_v29 = vrot.slane %v525_v20, 7  ;;  %v561_v30 = vrot.slane %v528_v21, 1  ;;  %v532_v31 = vshrl.u32 %v4189_v22, 16  ;;  %s3313_s8 = sshll.u32 %s5257_s22, 1  ;;  %v535_v34 = vshll.u32 %v4189_v22, 16 }
  0x1a   : > { %v558_v28 = vor.u32 %v557_v18, %v511_v11  ;;  %v560_v32 = vor.u32 %v559_v25, %v518_v15  ;;  %v516_v35 = vor.u32 %v514_v12, %v513_v17  ;;  %v523_v36 = vor.u32 %v521_v16, %v520_v24  ;;  %s419_s9 = sadd.s32 %s3313_s8, %s4472_s10  ;;  %s3318_s11 = sshll.u32 %s5259_s25, 1  ;;  %v654_v13 = vld [vmem:[#allocation2 + $0x10] sm:$0xff] (!%p3329_p11)  ;;  %v657_v17 = vld [vmem:[#allocation2 + $0x28] sm:$0xff] (!%p3329_p11)  ;;  %v642_v22 = vld [vmem:[#allocation2] sm:$0xff] (!%p3329_p11) }
  0x1b   : > { %v562_v40 = vor.u32 %v561_v30, %v525_v20  ;;  %v534_v41 = vrot.slane %v532_v31, 7  ;;  %v530_v42 = vor.u32 %v528_v21, %v527_v29  ;;  %s3315_s12 = sshll.u32 %s419_s9, 2  ;;  %s438_s13 = sadd.s32 %s3318_s11, %s4472_s10  ;;  %v563_v44 = vrot.slane %v535_v34, 1  ;;  %v645_v24 = vld [vmem:[#allocation2 + $0x18] sm:$0xff] (!%p3329_p11) }
  0x1c   : > { %v572_v39 = vsel %vm4491_vm6, %v558_v28, %v571_v14  ;;  %v575_v43 = vsel %vm4491_vm6, %v560_v32, %v574_v19  ;;  %v546_v45 = vsel %vm4497_vm7, %v516_v35, %v545_v26  ;;  %v549_v46 = vsel %vm4497_vm7, %v523_v36, %v548_v37  ;;  %s4514_s16 = scalar_lea.vmem %s5222_s1, %s3315_s12  ;;  %s3320_s17 = sshll.u32 %s438_s13, 2 }
  0x1d   : > { %573 = vst [vmem:[#allocation2 + $0x40] sm:$0xff] %v572_v39  ;;  %576 = vst [vmem:[#allocation2 + $0x58] sm:$0xff] %v575_v43  ;;  %v578_v48 = vsel %vm4491_vm6, %v562_v40, %v577_v33  ;;  %v552_v50 = vsel %vm4497_vm7, %v530_v42, %v551_v38  ;;  %v537_v51 = vor.u32 %v535_v34, %v534_v41  ;;  %s4523_s19 = scalar_lea.vmem %s5223_s2, %s3320_s17  ;;  %v4190_v5 = vld [vmem:[%s4514_s16] sm:$0xff] (!%p3329_p11)   ;;  %v4191_v6 = vld [vmem:[%s4514_s16 + $0x8] sm:$0xff] (!%p3329_p11)  }
  0x1e   : > { %547 = vst [vmem:[#allocation2 + $0x30] sm:$0xff] %v546_v45  ;;  %550 = vst [vmem:[#allocation2 + $0x48] sm:$0xff] %v549_v46  ;;  %v564_v52 = vor.u32 %v563_v44, %v532_v31  ;;  %v627_v7 = vshrl.u32 (!%p3329_p11), %v4190_v5, 16  ;;  %v630_v8 = vshll.u32 (!%p3329_p11), %v4190_v5, 16  ;;  %v634_v9 = vshrl.u32 (!%p3329_p11), %v4191_v6, 16 }
  0x1f   : > { %579 = vst [vmem:[#allocation2 + $0x70] sm:$0xff] %v578_v48  ;;  %553 = vst [vmem:[#allocation2 + $0x60] sm:$0xff] %v552_v50  ;;  %v555_v53 = vsel %vm4497_vm7, %v537_v51, %v554_v47  ;;  %v637_v10 = vshll.u32 (!%p3329_p11), %v4191_v6, 16 }
  0x20   : > { %v581_v54 = vsel %vm4491_vm6, %v564_v52, %v580_v49  ;;  %556 = vst [vmem:[#allocation2 + $0x78] sm:$0xff] %v555_v53  ;;  %618 = vst [vmem:[#allocation2 + $0x8] sm:$0xff] (!%p3329_p11), %v4190_v5  ;;  %v629_v11 = vrot.slane (!%p3329_p11), %v627_v7, 7  ;;  %v648_v12 = vrot.slane (!%p3329_p11), %v630_v8, 1  ;;  %v636_v14 = vrot.slane (!%p3329_p11), %v634_v9, 7 }
  0x21   : > { %582 = vst [vmem:[#allocation2 + $0x88] sm:$0xff] %v581_v54  ;;  %619 = vst [vmem:[#allocation2 + $0x20] sm:$0xff] (!%p3329_p11), %v4191_v6  ;;  %v650_v15 = vrot.slane (!%p3329_p11), %v637_v10, 1 }
  0x22   : > { %v649_v16 = vor.u32 (!%p3329_p11), %v648_v12, %v627_v7  ;;  %v632_v18 = vor.u32 (!%p3329_p11), %v630_v8, %v629_v11  ;;  %v639_v20 = vor.u32 (!%p3329_p11), %v637_v10, %v636_v14 }
  0x23   : > { %v651_v19 = vor.u32 (!%p3329_p11), %v650_v15, %v634_v9 }
  0x24   : > { %v586_v56 = vld [vmem:[#allocation2 + $0x40] sm:$0x80]  ;;  %v589_v58 = vld [vmem:[#allocation2 + $0x58] sm:$0x80]  ;;  %601 = sbr.rel (%p3329_p11) target bundleno = 49 (0x31), region = 52  ;;  %v655_v21 = vsel (!%p3329_p11), %vm4491_vm6, %v649_v16, %v654_v13  ;;  %v643_v26 = vsel (!%p3329_p11), %vm4497_vm7, %v632_v18, %v642_v22  ;;  %v646_v28 = vsel (!%p3329_p11), %vm4497_vm7, %v639_v20, %v645_v24 }
  0x25   : > { %v587_v57 = vsel %vm4529_vm10, 0, %v586_v56  ;;  %v590_v59 = vsel %vm4529_vm10, 0, %v589_v58  ;;  %656 = vst [vmem:[#allocation2 + $0x10] sm:$0xff] (!%p3329_p11), %v655_v21  ;;  %v658_v25 = vsel (!%p3329_p11), %vm4491_vm6, %v651_v19, %v657_v17  ;;  %644 = vst [vmem:[#allocation2] sm:$0xff] (!%p3329_p11), %v643_v26 }
  0x26   : > { %588 = vst [vmem:[#allocation2 + $0x40] sm:$0x80] %v587_v57  ;;  %v592_v60 = vld [vmem:[#allocation2 + $0x70] sm:$0x80]  ;;  %591 = vst [vmem:[#allocation2 + $0x58] sm:$0x80] %v590_v59 }
  0x27   : > { %v593_v61 = vsel %vm4529_vm10, 0, %v592_v60  ;;  %659 = vst [vmem:[#allocation2 + $0x28] sm:$0xff] (!%p3329_p11), %v658_v25  ;;  %647 = vst [vmem:[#allocation2 + $0x18] sm:$0xff] (!%p3329_p11), %v646_v28 }
  0x28   : > { %594 = vst [vmem:[#allocation2 + $0x70] sm:$0x80] %v593_v61  ;;  %v595_v62 = vld [vmem:[#allocation2 + $0x88] sm:$0x80] }
  0x29   : > { %v596_v63 = vsel %vm4529_vm10, 0, %v595_v62 }
  0x2a   : > { %597 = vst [vmem:[#allocation2 + $0x88] sm:$0x80] %v596_v63 }
  0x2c   : > { %v660_v29 = vld [vmem:[#allocation2 + $0x10] sm:$0x80] }
  0x2d   : > { %v661_v30 = vsel %vm4529_vm10, 0, %v660_v29 }
  0x2e   : > { %v663_v31 = vld [vmem:[#allocation2 + $0x28] sm:$0x80]  ;;  %662 = vst [vmem:[#allocation2 + $0x10] sm:$0x80] %v661_v30 }
  0x2f   : > { %v664_v32 = vsel %vm4529_vm10, 0, %v663_v31 }
  0x30   : > { %665 = vst [vmem:[#allocation2 + $0x28] sm:$0x80] %v664_v32 }
  0x31 PF: > { %p3332_p12 = scmp.ne.s32.totalorder %s4360_s24, 0 }
  0x32   : > { %v4378_v33 = vmov (!%p3332_p12), 0  }
  0x33   : > { %669 = sbr.rel (%p3332_p12) target bundleno = 58 (0x3a), region = 56  ;;  %670 = vst [vmem:[#allocation2] sm:$0xff] (!%p3332_p12), %v4378_v33  ;;  %671 = vst [vmem:[#allocation2 + $0x8] sm:$0xff] (!%p3332_p12), %v4378_v33 }
  0x34   : > { %672 = vst [vmem:[#allocation2 + $0x10] sm:$0xff] (!%p3332_p12), %v4378_v33  ;;  %673 = vst [vmem:[#allocation2 + $0x18] sm:$0xff] (!%p3332_p12), %v4378_v33 }
  0x35   : > { %674 = vst [vmem:[#allocation2 + $0x20] sm:$0xff] (!%p3332_p12), %v4378_v33  ;;  %675 = vst [vmem:[#allocation2 + $0x28] sm:$0xff] (!%p3332_p12), %v4378_v33 }
  0x3a PF: > { %p3333_p13 = scmp.ge.s32.totalorder %s4360_s24, 3 }
  0x3b   : > { %v699_v34 = vld [vmem:[#allocation2 + $0x90] sm:$0x1] (!%p3333_p13)  ;;  %v702_v35 = vld [vmem:[#allocation2 + $0xa8] sm:$0x1] (!%p3333_p13)  ;;  %v4192_v38 = vld [vmem:[%s4523_s19] sm:$0xff] (!%p3333_p13)  }
  0x3c   : > { %679 = sbr.rel (%p3333_p13) target bundleno = 78 (0x4e), region = 60  ;;  %v700_v36 = vsel (!%p3333_p13), %vm4457_vm2, 0, %v699_v34  ;;  %v703_v37 = vsel (!%p3333_p13), %vm4457_vm2, 0, %v702_v35  ;;  %v4193_v39 = vld [vmem:[%s4523_s19 + $0x8] sm:$0xff] (!%p3333_p13)   ;;  %v706_v40 = vshrl.u32 (!%p3333_p13), %v4192_v38, 16  ;;  %v709_v41 = vshll.u32 (!%p3333_p13), %v4192_v38, 16 }
  0x3d   : > { %701 = vst [vmem:[#allocation2 + $0x90] sm:$0x1] (!%p3333_p13), %v700_v36  ;;  %704 = vst [vmem:[#allocation2 + $0xa8] sm:$0x1] (!%p3333_p13), %v703_v37  ;;  %v713_v42 = vshrl.u32 (!%p3333_p13), %v4193_v39, 16  ;;  %v716_v43 = vshll.u32 (!%p3333_p13), %v4193_v39, 16 }
  0x3e   : > { %697 = vst [vmem:[#allocation2 + $0x98] sm:$0xff] (!%p3333_p13), %v4192_v38  ;;  %698 = vst [vmem:[#allocation2 + $0xb0] sm:$0xff] (!%p3333_p13), %v4193_v39  ;;  %v708_v44 = vrot.slane (!%p3333_p13), %v706_v40, 7  ;;  %v727_v45 = vrot.slane (!%p3333_p13), %v709_v41, 1  ;;  %v733_v46 = vld [vmem:[#allocation2 + $0xa0] sm:$0xff] (!%p3333_p13)  ;;  %v736_v50 = vld [vmem:[#allocation2 + $0xb8] sm:$0xff] (!%p3333_p13) }
  0x3f   : > { %v715_v47 = vrot.slane (!%p3333_p13), %v713_v42, 7  ;;  %v729_v48 = vrot.slane (!%p3333_p13), %v716_v43, 1 }
  0x40   : > { %v728_v49 = vor.u32 (!%p3333_p13), %v727_v45, %v706_v40  ;;  %v711_v51 = vor.u32 (!%p3333_p13), %v709_v41, %v708_v44 }
  0x41   : > { %v730_v52 = vor.u32 (!%p3333_p13), %v729_v48, %v713_v42  ;;  %v718_v53 = vor.u32 (!%p3333_p13), %v716_v43, %v715_v47 }
  0x42   : > { %v734_v54 = vsel (!%p3333_p13), %vm4491_vm6, %v728_v49, %v733_v46 }
  0x43   : > { %735 = vst [vmem:[#allocation2 + $0xa0] sm:$0xff] %v734_v54  ;;  %v737_v58 = vsel %vm4491_vm6, %v730_v52, %v736_v50 }
  0x44   : > { %v721_v56 = vld [vmem:[#allocation2 + $0x90] sm:$0xff]  ;;  %v724_v57 = vld [vmem:[#allocation2 + $0xa8] sm:$0xff]  ;;  %738 = vst [vmem:[#allocation2 + $0xb8] sm:$0xff] %v737_v58 }
  0x45   : > { %v722_v59 = vsel %vm4497_vm7, %v711_v51, %v721_v56  ;;  %v725_v60 = vsel %vm4497_vm7, %v718_v53, %v724_v57 }
  0x46   : > { %723 = vst [vmem:[#allocation2 + $0x90] sm:$0xff] %v722_v59  ;;  %726 = vst [vmem:[#allocation2 + $0xa8] sm:$0xff] %v725_v60 }
  0x4a   : > { %v739_v61 = vld [vmem:[#allocation2 + $0xa0] sm:$0x80] }
  0x4b   : > { %v740_v62 = vsel %vm4529_vm10, 0, %v739_v61  ;;  %v742_v63 = vld [vmem:[#allocation2 + $0xb8] sm:$0x80] }
  0x4c   : > { %741 = vst [vmem:[#allocation2 + $0xa0] sm:$0x80] %v740_v62  ;;  %v743_v0 = vsel %vm4529_vm10, 0, %v742_v63 }
  0x4d   : > { %744 = vst [vmem:[#allocation2 + $0xb8] sm:$0x80] %v743_v0 }
  0x4e PF: > { %p3336_p0 = scmp.ne.s32.totalorder %s4360_s24, 3 }
  0x4f   : > { %v4379_v2 = vmov (!%p3336_p0), 0  }
  0x50   : > { %748 = sbr.rel (%p3336_p0) target bundleno = 87 (0x57), region = 64  ;;  %750 = vst [vmem:[#allocation2 + $0x90] sm:$0xff] (!%p3336_p0), %v4379_v2  ;;  %751 = vst [vmem:[#allocation2 + $0x98] sm:$0xff] (!%p3336_p0), %v4379_v2 }
  0x51   : > { %752 = vst [vmem:[#allocation2 + $0xa0] sm:$0xff] (!%p3336_p0), %v4379_v2  ;;  %753 = vst [vmem:[#allocation2 + $0xa8] sm:$0xff] (!%p3336_p0), %v4379_v2 }
  0x52   : > { %754 = vst [vmem:[#allocation2 + $0xb0] sm:$0xff] (!%p3336_p0), %v4379_v2  ;;  %755 = vst [vmem:[#allocation2 + $0xb8] sm:$0xff] (!%p3336_p0), %v4379_v2 }
  0x57 PF: > { %v4194_v3 = vld [vmem:[%s5224_s3 + $0x100] sm:$0xff]   ;;  %v4197_v6 = vld [vmem:[%s5224_s3 + $0x108] sm:$0xff]   ;;  %v4200_v9 = vld [vmem:[%s5224_s3 + $0x110] sm:$0xff]   ;;  %v4380_v23 = vmov (!%p3332_p12), 0  }
  0x58   : > { %v4195_v4 = vld [vmem:[%s5224_s3 + $0x140] sm:$0xff]   ;;  %3532 = vmatprep.subr.bf16.mxu0 %v4194_v3  ;;  %v4198_v7 = vld [vmem:[%s5224_s3 + $0x148] sm:$0xff]   ;;  %v4201_v10 = vld [vmem:[%s5224_s3 + $0x150] sm:$0xff]  }
  0x59   : > { %v4196_v5 = vld [vmem:[%s5224_s3 + $0xc0] sm:$0xff]   ;;  %3886 = vmatprep.subr.bf16.mxu1 %v4195_v4  ;;  %v4199_v8 = vld [vmem:[%s5224_s3 + $0xc8] sm:$0xff]   ;;  %v4202_v11 = vld [vmem:[%s5224_s3 + $0xd0] sm:$0xff]  }
  0x5a   : > { %3533 = vmatpush3.bf16.msra.mxu0 %v4196_v5  ;;  %3887 = vmatpush3.bf16.msra.mxu1 %v4195_v4  ;;  %v4203_v12 = vld [vmem:[%s5224_s3 + $0x118] sm:$0xff]   ;;  %v4206_v15 = vld [vmem:[%s5224_s3 + $0x120] sm:$0xff]   ;;  %v4209_v18 = vld [vmem:[%s5224_s3 + $0x128] sm:$0xff]  }
  0x5b   : > { %3534 = vmatprep.subr.bf16.mxu0 %v4197_v6  ;;  %3888 = vmatprep.subr.bf16.mxu1 %v4198_v7  ;;  %v4204_v13 = vld [vmem:[%s5224_s3 + $0x158] sm:$0xff]   ;;  %v4207_v16 = vld [vmem:[%s5224_s3 + $0x160] sm:$0xff]   ;;  %v4210_v19 = vld [vmem:[%s5224_s3 + $0x168] sm:$0xff]  }
  0x5c   : > { %v4205_v14 = vld [vmem:[%s5224_s3 + $0xd8] sm:$0xff]   ;;  %v4208_v17 = vld [vmem:[%s5224_s3 + $0xe0] sm:$0xff]   ;;  %v4211_v20 = vld [vmem:[%s5224_s3 + $0xe8] sm:$0xff]  }
  0x5d   : > { %v4212_v21 = vld [vmem:[%s5224_s3 + $0x130] sm:$0xff]   ;;  %v4215_v25 = vld [vmem:[%s5224_s3 + $0x138] sm:$0xff]   ;;  %v4651_v26 = vld [vmem:[#allocation2 + $0x20] sm:$0xff] }
  0x5e   : > { %3535 = vmatpush3.bf16.msra.mxu0 %v4199_v8  ;;  %3889 = vmatpush3.bf16.msra.mxu1 %v4198_v7  ;;  %v4213_v22 = vld [vmem:[%s5224_s3 + $0x170] sm:$0xff]   ;;  %v4653_v28 = vld [vmem:[#allocation2 + $0x28] sm:$0xff]  ;;  %v4216_v29 = vld [vmem:[%s5224_s3 + $0x178] sm:$0xff]  }
  0x5f   : > { %3536 = vmatprep.subr.bf16.mxu0 %v4200_v9  ;;  %3890 = vmatprep.subr.bf16.mxu1 %v4201_v10  ;;  %v4214_v24 = vld [vmem:[%s5224_s3 + $0xf0] sm:$0xff]   ;;  %v4217_v30 = vld [vmem:[%s5224_s3 + $0xf8] sm:$0xff]   ;;  %v4218_v31 = vld [vmem:[%s5224_s3 + $0x40] sm:$0xff]  }
  0x60   : > { %1065 = vmatprep.mubr.bf16.mxu0 %v4651_v26  ;;  %3902 = vmatprep.mubr.bf16.mxu1 %v4653_v28  ;;  %v4666_v32 = vld [vmem:[#allocation2 + $0x18] sm:$0xff]  ;;  %v4668_v33 = vld [vmem:[#allocation2 + $0x40] sm:$0xff]  ;;  %v4220_v35 = vld [vmem:[%s5224_s3 + $0x48] sm:$0xff]  }
  0x61   : > { %v4219_v34 = vld [vmem:[%s5224_s3] sm:$0xff]   ;;  %v4676_v36 = vld [vmem:[#allocation2 + $0x38] sm:$0xff]  ;;  %v4221_v38 = vld [vmem:[%s5224_s3 + $0x8] sm:$0xff]  }
  0x62   : > { %3537 = vmatpush3.bf16.msra.mxu0 %v4202_v11  ;;  %3891 = vmatpush3.bf16.msra.mxu1 %v4201_v10  ;;  %v4678_v37 = vld [vmem:[#allocation2 + $0x58] sm:$0xff]  ;;  %v4222_v39 = vld [vmem:[%s5224_s3 + $0x50] sm:$0xff]   ;;  %v4227_v40 = vld [vmem:[%s5224_s3 + $0x1c0] sm:$0xff]  }
  0x63   : > { %3538 = vmatprep.subr.bf16.mxu0 %v4203_v12  ;;  %3892 = vmatprep.subr.bf16.mxu1 %v4204_v13  ;;  %v4693_v41 = vld [vmem:[#allocation2 + $0x30] sm:$0xff]  ;;  %v4224_v43 = vld [vmem:[%s5224_s3 + $0x58] sm:$0xff]   ;;  %v4229_v45 = vld [vmem:[%s5224_s3 + $0x180] sm:$0xff]  }
  0x64   : > { %v4223_v42 = vld [vmem:[%s5224_s3 + $0x10] sm:$0xff]   ;;  %v4231_v47 = vld [vmem:[%s5224_s3 + $0x1c8] sm:$0xff]   ;;  %v4225_v50 = vld [vmem:[%s5224_s3 + $0x18] sm:$0xff]  }
  0x65   : > { %v4701_v44 = vld [vmem:[#allocation2 + $0x50] sm:$0xff]  ;;  %v4233_v48 = vld [vmem:[%s5224_s3 + $0x188] sm:$0xff]   ;;  %v4226_v51 = vld [vmem:[%s5224_s3 + $0x60] sm:$0xff]  }
  0x66   : > { %3539 = vmatpush3.bf16.msra.mxu0 %v4205_v14  ;;  %3893 = vmatpush3.bf16.msra.mxu1 %v4204_v13  ;;  %v4706_v46 = vld [vmem:[#allocation2 + $0x70] sm:$0xff]  ;;  %v4716_v49 = vld [vmem:[#allocation2 + $0x88] sm:$0xff]  ;;  %v4228_v53 = vld [vmem:[%s5224_s3 + $0x20] sm:$0xff]  }
  0x67   : > { %3540 = vmatprep.subr.bf16.mxu0 %v4206_v15  ;;  %3894 = vmatprep.subr.bf16.mxu1 %v4207_v16  ;;  %v4725_v52 = vld [vmem:[#allocation2 + $0x48] sm:$0xff]  ;;  %v4235_v54 = vld [vmem:[%s5224_s3 + $0x1d0] sm:$0xff]   ;;  %v4737_v57 = vld [vmem:[#allocation2 + $0xa0] sm:$0xff] }
  0x68   : > { %v4230_v56 = vld [vmem:[%s5224_s3 + $0x68] sm:$0xff]   ;;  %v4237_v58 = vld [vmem:[%s5224_s3 + $0x190] sm:$0xff]   ;;  %v4239_v60 = vld [vmem:[%s5224_s3 + $0x1d8] sm:$0xff]  }
  0x69   : > { %v4742_v59 = vld [vmem:[#allocation2 + $0x68] sm:$0xff]  ;;  %v4241_v62 = vld [vmem:[%s5224_s3 + $0x198] sm:$0xff]   ;;  %v4234_v63 = vld [vmem:[%s5224_s3 + $0x70] sm:$0xff]  }
  0x6a   : > { %3541 = vmatpush3.bf16.msra.mxu0 %v4208_v17  ;;  %3895 = vmatpush3.bf16.msra.mxu1 %v4207_v16  ;;  %v4232_v61 = vld [vmem:[%s5224_s3 + $0x28] sm:$0xff]   ;;  %v4759_v2 = vld [vmem:[#allocation2 + $0x60] sm:$0xff]  ;;  %v4236_v3 = vld [vmem:[%s5224_s3 + $0x30] sm:$0xff]  }
  0x6b   : > { %3542 = vmatprep.subr.bf16.mxu0 %v4209_v18  ;;  %3896 = vmatprep.subr.bf16.mxu1 %v4210_v19  ;;  %v757_v0 = vld [vmem:[#allocation2 + $0x8] sm:$0xff]  ;;  %v4238_v4 = vld [vmem:[%s5224_s3 + $0x78] sm:$0xff]   ;;  %v4767_v5 = vld [vmem:[#allocation2 + $0x80] sm:$0xff] }
  0x6c   : > { %v4243_v6 = vld [vmem:[%s5224_s3 + $0x1e0] sm:$0xff]   ;;  %v4245_v8 = vld [vmem:[%s5224_s3 + $0x1e8] sm:$0xff]   ;;  %v4240_v10 = vld [vmem:[%s5224_s3 + $0x38] sm:$0xff]  }
  0x6d   : > { %v4244_v7 = vld [vmem:[%s5224_s3 + $0x1a0] sm:$0xff]   ;;  %v4246_v9 = vld [vmem:[%s5224_s3 + $0x1a8] sm:$0xff]   ;;  %v4248_v12 = vld [vmem:[%s5224_s3 + $0x1f0] sm:$0xff]  }
  0x6e   : > { %3543 = vmatpush3.bf16.msra.mxu0 %v4211_v20  ;;  %3897 = vmatpush3.bf16.msra.mxu1 %v4210_v19  ;;  %v4242_v11 = vld [vmem:[%s5224_s3 + $0x80] sm:$0xff]   ;;  %v835_v13 = vld [vmem:[#allocation2 + $0x78] sm:$0xff]  ;;  %v4249_v14 = vld [vmem:[%s5224_s3 + $0x1b0] sm:$0xff]  }
  0x6f   : > { %3544 = vmatprep.subr.bf16.mxu0 %v4212_v21  ;;  %3898 = vmatprep.subr.bf16.mxu1 %v4213_v22  ;;  %v756_v15 = vld [vmem:[#allocation2] sm:$0xff]  ;;  %v4247_v16 = vld [vmem:[%s5224_s3 + $0x88] sm:$0xff]   ;;  %v839_v17 = vld [vmem:[#allocation2 + $0x98] sm:$0xff] }
  0x70   : > { %v4251_v18 = vld [vmem:[%s5224_s3 + $0x1f8] sm:$0xff]   ;;  %v4250_v20 = vld [vmem:[%s5224_s3 + $0x90] sm:$0xff]  }
  0x71   : > { %v4252_v19 = vld [vmem:[%s5224_s3 + $0x1b8] sm:$0xff]   ;;  %v838_v21 = vld [vmem:[#allocation2 + $0x90] sm:$0xff] }
  0x72   : > { %3545 = vmatpush3.bf16.msra.mxu0 %v4214_v24  ;;  %3899 = vmatpush3.bf16.msra.mxu1 %v4213_v22  ;;  %v4253_v22 = vld [vmem:[%s5224_s3 + $0x98] sm:$0xff]   ;;  %v4254_v24 = vld [vmem:[%s5224_s3 + $0xa0] sm:$0xff]  }
  0x73   : > { %3546 = vmatprep.subr.bf16.mxu0 %v4215_v25  ;;  %3900 = vmatprep.subr.bf16.mxu1 %v4216_v29  ;;  %v4255_v25 = vld [vmem:[%s5224_s3 + $0xa8] sm:$0xff]  }
  0x76   : > { %3547 = vmatpush3.bf16.msra.mxu0 %v4217_v30  ;;  %3901 = vmatpush3.bf16.msra.mxu1 %v4216_v29  ;;  %v4257_v29 = vld [vmem:[%s5224_s3 + $0xb8] sm:$0xff]   ;;  %v4258_v30 = vld [vmem:[%s5224_s3 + $0x200] sm:$0xff]  }
  0x77   : > { %3598 = vmatprep.subr.bf16.mxu1 %v4218_v31  ;;  %3664 = vmatprep.subr.bf16.mxu0 %v4227_v40  ;;  %v758_v31 = vld [vmem:[#allocation2 + $0x10] sm:$0xff] }
  0x78   : > { %v4264_v40 = vld [vmem:[%s5224_s3 + $0x230] sm:$0xff]  }
  0x79   : > { %1066 = vmatmul.mubr.bf16.vlgmr.msra.gmra.mrb[0].mxu0 %v4666_v32  ;;  %3903 = vmatmul.mubr.bf16.vlgmr.msra.gmra.mrb[0].mxu1 %v4668_v33 }
  0x7a   : > { %3599 = vmatpush3.bf16.msra.mxu1 %v4219_v34  ;;  %1073 = vmatprep.mubr.bf16.mxu0 %v4676_v36  ;;  %v1517_v34 = vld [vmem:[#allocation2 + $0xb0] sm:$0xff] }
  0x7b   : > { %3600 = vmatprep.subr.bf16.mxu1 %v4220_v35  ;;  %3906 = vmatprep.mubr.bf16.mxu1 %v4678_v37  ;;  %v4260_v35 = vld [vmem:[%s5224_s3 + $0x210] sm:$0xff]  }
  0x7c   : > { %3665 = vmatpush3.bf16.msra.mxu0 %v4229_v45 }
  0x7d   : > { %3666 = vmatprep.subr.bf16.mxu0 %v4231_v47  ;;  %v1937_v47 = vld [vmem:[#allocation3 + $0x48] sm:$0x1] }
  0x7e   : > { %3601 = vmatpush3.bf16.msra.mxu1 %v4221_v38  ;;  %v4261_v38 = vld [vmem:[%s5224_s3 + $0x218] sm:$0xff]  }
  0x7f   : > { %3602 = vmatprep.subr.bf16.mxu1 %v4222_v39  ;;  %v4263_v39 = vld [vmem:[%s5224_s3 + $0x228] sm:$0xff]  }
  0x80   : > { %3667 = vmatpush3.bf16.msra.mxu0 %v4233_v48  ;;  %v1934_v48 = vld [vmem:[#allocation3 + $0x30] sm:$0x1] }
  0x81   : > { %1074 = vmatmul.mubr.bf16.gmra.mrb[4].mxu0 %v4693_v41  ;;  %3907 = vmatmul.mubr.bf16.gmra.mrb[4].mxu1 %v4706_v46 }
  0x82   : > { %3603 = vmatpush3.bf16.msra.mxu1 %v4223_v42  ;;  %1081 = vmatprep.mubr.bf16.mxu0 %v4701_v44  ;;  %v1931_v42 = vld [vmem:[#allocation3 + $0x18] sm:$0x1] }
  0x83   : > { %3604 = vmatprep.subr.bf16.mxu1 %v4224_v43  ;;  %3910 = vmatprep.mubr.bf16.mxu1 %v4716_v49  ;;  %v1932_v43 = vsel %vm4457_vm2, 0, %v1931_v42 }
  0x84   : > { %3668 = vmatprep.subr.bf16.mxu0 %v4235_v54  ;;  %1933 = vst [vmem:[#allocation3 + $0x18] sm:$0x1] %v1932_v43 }
  0x85   : > { %3669 = vmatpush3.bf16.msra.mxu0 %v4237_v58 }
  0x86   : > { %3605 = vmatpush3.bf16.msra.mxu1 %v4225_v50  ;;  %3670 = vmatprep.subr.bf16.mxu0 %v4239_v60  ;;  %v1935_v50 = vsel %vm4457_vm2, 0, %v1934_v48 }
  0x87   : > { %3606 = vmatprep.subr.bf16.mxu1 %v4226_v51  ;;  %1936 = vst [vmem:[#allocation3 + $0x30] sm:$0x1] %v1935_v50 }
  0x89   : > { %1082 = vmatmul.mubr.bf16.gmra.mrb[8].mxu0 %v4725_v52  ;;  %3911 = vmatmul.mubr.bf16.gmra.mrb[8].mxu1 %v4737_v57 }
  0x8a   : > { %3607 = vmatpush3.bf16.msra.mxu1 %v4228_v53  ;;  %1089 = vmatprep.mubr.bf16.mxu0 %v4742_v59 }
  0x8b   : > { %3608 = vmatprep.subr.bf16.mxu1 %v4230_v56  ;;  %3671 = vmatpush3.bf16.msra.mxu0 %v4241_v62  ;;  %v1943_v56 = vld [vmem:[#allocation3 + $0x78] sm:$0x1] }
  0x8c   : > { %1371 = vmatprep.mubr.bf16.mxu1 %v757_v0  ;;  %3672 = vmatprep.subr.bf16.mxu0 %v4243_v6  ;;  %v1944_v58 = vsel %vm4457_vm2, 0, %v1943_v56 }
  0x8d   : > { %1945 = vst [vmem:[#allocation3 + $0x78] sm:$0x1] %v1944_v58 }
  0x8e   : > { %3609 = vmatpush3.bf16.msra.mxu1 %v4232_v61 }
  0x8f   : > { %3610 = vmatprep.subr.bf16.mxu1 %v4234_v63  ;;  %3673 = vmatpush3.bf16.msra.mxu0 %v4244_v7 }
  0x90   : > { %3674 = vmatprep.subr.bf16.mxu0 %v4245_v8 }
  0x91   : > { %1090 = vmatmul.mubr.bf16.gmra.mrb[12].mxu0 %v4759_v2 }
  0x92   : > { %3611 = vmatpush3.bf16.msra.mxu1 %v4236_v3  ;;  %1097 = vmatprep.mubr.bf16.mxu0 %v4767_v5 }
  0x93   : > { %3612 = vmatprep.subr.bf16.mxu1 %v4238_v4  ;;  %3675 = vmatpush3.bf16.msra.mxu0 %v4246_v9 }
  0x94   : > { %3676 = vmatprep.subr.bf16.mxu0 %v4248_v12 }
  0x96   : > { %3613 = vmatpush3.bf16.msra.mxu1 %v4240_v10 }
  0x97   : > { %3914 = vmatprep.subr.bf16.mxu1 %v4242_v11  ;;  %3677 = vmatpush3.bf16.msra.mxu0 %v4249_v14 }
  0x98   : > { %3678 = vmatprep.subr.bf16.mxu0 %v4251_v18 }
  0x99   : > { %1098 = vmatmul.mubr.bf16.gmra.mrb[16].mxu0 %v835_v13  ;;  %1372 = vmatmul.mubr.bf16.vlgmr.msra.gmra.mrb[12].mxu1 %v756_v15 }
  0x9a   : > { %3915 = vmatpush3.bf16.msra.mxu1 %v4242_v11  ;;  %1105 = vmatprep.mubr.bf16.mxu0 %v839_v17 }
  0x9b   : > { %3916 = vmatprep.subr.bf16.mxu1 %v4247_v16  ;;  %1379 = vmatprep.mubr.bf16.mxu1 %v4651_v26  ;;  %v4256_v26 = vld [vmem:[%s5224_s3 + $0xb0] sm:$0xff]  }
  0x9c   : > { %3679 = vmatpush3.bf16.msra.mxu0 %v4252_v19 }
  0x9e   : > { %3917 = vmatpush3.bf16.msra.mxu1 %v4247_v16 }
  0x9f   : > { %3918 = vmatprep.subr.bf16.mxu1 %v4250_v20 }
  0xa1   : > { %1106 = vmatmul.mubr.bf16.gmra.mrb[20].mxu0 %v838_v21  ;;  %1380 = vmatmul.mubr.bf16.gmra.mrb[16].mxu1 %v4666_v32  ;;  %v4259_v32 = vld [vmem:[%s5224_s3 + $0x208] sm:$0xff]  }
  0xa2   : > { %3919 = vmatpush3.bf16.msra.mxu1 %v4250_v20  ;;  %1387 = vmatprep.mubr.bf16.mxu1 %v4676_v36 }
  0xa3   : > { %1743 = vmatprep.mubr.bf16.mxu0 %v4676_v36  ;;  %3920 = vmatprep.subr.bf16.mxu1 %v4253_v22  ;;  %v1516_v36 = vld [vmem:[#allocation2 + $0xa8] sm:$0xff] }
  0xa6   : > { %3921 = vmatpush3.bf16.msra.mxu1 %v4253_v22 }
  0xa7   : > { %3922 = vmatprep.subr.bf16.mxu1 %v4254_v24 }
  0xa9   : > { %1388 = vmatmul.mubr.bf16.gmra.mrb[20].mxu1 %v4693_v41  ;;  %1744 = vmatmul.mubr.bf16.vlgmr.msra.gmra.mrb[24].mxu0 %v4693_v41  ;;  %v4265_v41 = vld [vmem:[%s5224_s3 + $0x238] sm:$0xff]  }
  0xaa   : > { %1395 = vmatprep.mubr.bf16.mxu1 %v4701_v44  ;;  %1751 = vmatprep.mubr.bf16.mxu0 %v4701_v44  ;;  %v1928_v44 = vld [vmem:[#allocation3] sm:$0x1] }
  0xab   : > { %3923 = vmatpush3.bf16.msra.mxu1 %v4254_v24  ;;  %v1929_v45 = vsel %vm4457_vm2, 0, %v1928_v44 }
  0xac   : > { %3924 = vmatprep.subr.bf16.mxu1 %v4255_v25  ;;  %1930 = vst [vmem:[#allocation3] sm:$0x1] %v1929_v45 }
  0xaf   : > { %3925 = vmatpush3.bf16.msra.mxu1 %v4255_v25 }
  0xb0   : > { %3926 = vmatprep.subr.bf16.mxu1 %v4256_v26 }
  0xb1   : > { %1396 = vmatmul.mubr.bf16.gmra.mrb[24].mxu1 %v4725_v52  ;;  %1752 = vmatmul.mubr.bf16.gmra.mrb[28].mxu0 %v4725_v52 }
  0xb2   : > { %1403 = vmatprep.mubr.bf16.mxu1 %v4742_v59  ;;  %1759 = vmatprep.mubr.bf16.mxu0 %v4742_v59  ;;  %v1940_v59 = vld [vmem:[#allocation3 + $0x60] sm:$0x1] }
  0xb3   : > { %3927 = vmatpush3.bf16.msra.mxu1 %v4256_v26  ;;  %v1941_v61 = vsel %vm4457_vm2, 0, %v1940_v59 }
  0xb4   : > { %3928 = vmatprep.subr.bf16.mxu1 %v4257_v29  ;;  %1942 = vst [vmem:[#allocation3 + $0x60] sm:$0x1] %v1941_v61 }
  0xb7   : > { %3929 = vmatpush3.bf16.msra.mxu1 %v4257_v29 }
  0xb8   : > { %3942 = vmatprep.subr.bf16.mxu1 %v4258_v30 }
  0xb9   : > { %1404 = vmatmul.mubr.bf16.gmra.mrb[28].mxu1 %v4759_v2  ;;  %1760 = vmatmul.mubr.bf16.gmra.mrb[32].mxu0 %v4759_v2 }
  0xba   : > { %1411 = vmatprep.mubr.bf16.mxu1 %v4767_v5  ;;  %1767 = vmatprep.mubr.bf16.mxu0 %v4767_v5 }
  0xc1   : > { %1412 = vmatmul.mubr.bf16.gmra.mrb[32].mxu1 %v835_v13  ;;  %1768 = vmatmul.mubr.bf16.gmra.mrb[36].mxu0 %v835_v13 }
  0xc2   : > { %3930 = vmatprep.mubr.bf16.mxu1 %v758_v31  ;;  %1775 = vmatprep.mubr.bf16.mxu0 %v839_v17 }
  0xc9   : > { %3931 = vmatmul.mubr.bf16.vlgmr.msra.gmra.mrb[0].mxu1 %v4653_v28  ;;  %1776 = vmatmul.mubr.bf16.gmra.mrb[40].mxu0 %v838_v21  ;;  %v4262_v28 = vld [vmem:[%s5224_s3 + $0x220] sm:$0xff]  }
  0xca   : > { %3943 = vmatpush3.bf16.msra.mxu1 %v4258_v30  ;;  %1783 = vmatprep.mubr.bf16.mxu0 %v1517_v34 }
  0xcb   : > { %3944 = vmatprep.subr.bf16.mxu1 %v4259_v32  ;;  %3934 = vmatprep.mubr.bf16.mxu1 %v4668_v33 }
  0xce   : > { %3945 = vmatpush3.bf16.msra.mxu1 %v4259_v32 }
  0xcf   : > { %3946 = vmatprep.subr.bf16.mxu1 %v4260_v35 }
  0xd1   : > { %1784 = vmatmul.mubr.bf16.gmra.mrb[44].mxu0 %v1516_v36  ;;  %3935 = vmatmul.mubr.bf16.gmra.mrb[4].mxu1 %v4678_v37 }
  0xd2   : > { %3947 = vmatpush3.bf16.msra.mxu1 %v4260_v35  ;;  %3938 = vmatprep.mubr.bf16.mxu1 %v4706_v46 }
  0xd3   : > { %3948 = vmatprep.subr.bf16.mxu1 %v4261_v38 }
  0xd6   : > { %3949 = vmatpush3.bf16.msra.mxu1 %v4261_v38 }
  0xd7   : > { %3950 = vmatprep.subr.bf16.mxu1 %v4262_v28 }
  0xd9   : > { %3939 = vmatmul.mubr.bf16.gmra.mrb[8].mxu1 %v4716_v49 }
  0xda   : > { %3951 = vmatpush3.bf16.msra.mxu1 %v4262_v28  ;;  %3958 = vmatprep.mubr.bf16.mxu1 %v4668_v33  ;;  %v1518_v33 = vld [vmem:[#allocation2 + $0xb8] sm:$0xff] }
  0xdb   : > { %3952 = vmatprep.subr.bf16.mxu1 %v4263_v39 }
  0xde   : > { %3953 = vmatpush3.bf16.msra.mxu1 %v4263_v39 }
  0xdf   : > { %3954 = vmatprep.subr.bf16.mxu1 %v4264_v40 }
  0xe2   : > { %3955 = vmatpush3.bf16.msra.mxu1 %v4264_v40 }
  0xe3   : > { %3956 = vmatprep.subr.bf16.mxu1 %v4265_v41 }
  0xe6   : > { %3957 = vmatpush3.bf16.msra.mxu1 %v4265_v41 }
  0xe9   : > { %3959 = vmatmul.mubr.bf16.vlgmr.msra.gmra.mrb[0].mxu1 %v4678_v37 }
  0xea   : > { %3962 = vmatprep.mubr.bf16.mxu1 %v4706_v46  ;;  %v1938_v46 = vsel %vm4457_vm2, 0, %v1937_v47 }
  0xeb   : > { %1939 = vst [vmem:[#allocation3 + $0x48] sm:$0x1] %v1938_v46 }
  0xf1   : > { %3963 = vmatmul.mubr.bf16.gmra.mrb[4].mxu1 %v4716_v49 }
  0xf2   : > { %3966 = vmatprep.mubr.bf16.mxu1 %v4737_v57 }
  0xf9   : > { %3967 = vmatmul.mubr.bf16.gmra.mrb[8].mxu1 %v1518_v33 }
 0x14c   : > { %v3548_v37 = vpop.f32.mrb[0].mxu0 }
 0x14d   : > { %v3549_v49 = vpop.f32.mrb[1].mxu0 }
 0x14e   : > { %v3550_v51 = vadd.f32 %v3549_v49, %v3548_v37  ;;  %v3551_v52 = vpop.f32.mrb[2].mxu0 }
 0x14f   : > { %v3552_v53 = vpop.f32.mrb[3].mxu0 }
 0x150   : > { %v3553_v54 = vadd.f32 %v3552_v53, %v3551_v52 }
 0x154   : > { %v3554_v57 = vpop.f32.mrb[4].mxu0 }
 0x155   : > { %v3555_v60 = vpop.f32.mrb[5].mxu0 }
 0x156   : > { %v3556_v62 = vadd.f32 %v3555_v60, %v3554_v57  ;;  %v3557_v63 = vpop.f32.mrb[6].mxu0 }
 0x157   : > { %v3558_v0 = vpop.f32.mrb[7].mxu0 }
 0x158   : > { %v3559_v2 = vadd.f32 %v3558_v0, %v3557_v63 }
 0x15c   : > { %v3560_v3 = vpop.f32.mrb[8].mxu0 }
 0x15d   : > { %v3561_v4 = vpop.f32.mrb[9].mxu0 }
 0x15e   : > { %v3562_v5 = vadd.f32 %v3561_v4, %v3560_v3  ;;  %v3563_v6 = vpop.f32.mrb[10].mxu0 }
 0x15f   : > { %v3564_v7 = vpop.f32.mrb[11].mxu0 }
 0x160   : > { %v3565_v8 = vadd.f32 %v3564_v7, %v3563_v6 }
 0x164   : > { %v3566_v9 = vpop.f32.mrb[12].mxu0 }
 0x165   : > { %v3567_v10 = vpop.f32.mrb[13].mxu0 }
 0x166   : > { %v3568_v11 = vadd.f32 %v3567_v10, %v3566_v9  ;;  %v3569_v12 = vpop.f32.mrb[14].mxu0 }
 0x167   : > { %v3570_v13 = vpop.f32.mrb[15].mxu0 }
 0x168   : > { %v3571_v14 = vadd.f32 %v3570_v13, %v3569_v12 }
 0x16c   : > { %v3614_v15 = vpop.f32.mrb[12].mxu1  ;;  %v3572_v1 = vpop.f32.mrb[16].mxu0 }
 0x16d   : > { %v3615_v16 = vpop.f32.mrb[13].mxu1  ;;  %v3573_v17 = vpop.f32.mrb[17].mxu0 }
 0x16e   : > { %v3616_v18 = vadd.f32 %v3615_v16, %v3614_v15  ;;  %v3617_v19 = vpop.f32.mrb[14].mxu1  ;;  %v4884_v20 = vadd.f32 %v3573_v17, %v3572_v1  ;;  %v3575_v21 = vpop.f32.mrb[18].mxu0 }
 0x16f   : > { %v3618_v22 = vpop.f32.mrb[15].mxu1  ;;  %v3576_v24 = vpop.f32.mrb[19].mxu0 }
 0x170   : > { %v4045_v25 = vadd.f32 %v3616_v18, %v3550_v51  ;;  %v3619_v26 = vadd.f32 %v3618_v22, %v3617_v19  ;;  %v3577_v29 = vadd.f32 %v3576_v24, %v3575_v21 }
 0x172   : > { %v4051_v30 = vadd.f32 %v3619_v26, %v3553_v54 }
 0x174   : > { %v3620_v31 = vpop.f32.mrb[16].mxu1  ;;  %v3578_v32 = vpop.f32.mrb[20].mxu0 }
 0x175   : > { %v3621_v34 = vpop.f32.mrb[17].mxu1  ;;  %v3579_v35 = vpop.f32.mrb[21].mxu0 }
 0x176   : > { %v3622_v36 = vadd.f32 %v3621_v34, %v3620_v31  ;;  %v3623_v38 = vpop.f32.mrb[18].mxu1  ;;  %v4886_v28 = vadd.f32 %v3579_v35, %v3578_v32  ;;  %v3581_v39 = vpop.f32.mrb[22].mxu0 }
 0x177   : > { %v3624_v40 = vpop.f32.mrb[19].mxu1  ;;  %v3582_v41 = vpop.f32.mrb[23].mxu0 }
 0x178   : > { %v4042_v33 = vadd.f32 %v3622_v36, %v3556_v62  ;;  %v3625_v42 = vadd.f32 %v3624_v40, %v3623_v38  ;;  %v4888_v43 = vadd.f32 %v3582_v41, %v3581_v39 }
 0x17a   : > { %v4048_v44 = vadd.f32 %v3625_v42, %v3559_v2 }
 0x17c   : > { %v3626_v45 = vpop.f32.mrb[20].mxu1  ;;  %v3680_v47 = vpop.f32.mrb[24].mxu0 }
 0x17d   : > { %v3627_v37 = vpop.f32.mrb[21].mxu1  ;;  %v3681_v46 = vpop.f32.mrb[25].mxu0 }
 0x17e   : > { %v3628_v48 = vadd.f32 %v3627_v37, %v3626_v45  ;;  %v3682_v49 = vadd.f32 %v3681_v46, %v3680_v47  ;;  %v3629_v50 = vpop.f32.mrb[22].mxu1  ;;  %v3683_v51 = vpop.f32.mrb[26].mxu0 }
 0x17f   : > { %v3630_v52 = vpop.f32.mrb[23].mxu1  ;;  %v3684_v53 = vpop.f32.mrb[27].mxu0 }
 0x180   : > { %v4057_v54 = vadd.f32 %v3628_v48, %v3562_v5  ;;  %v3631_v56 = vadd.f32 %v3630_v52, %v3629_v50  ;;  %v3685_v57 = vadd.f32 %v3684_v53, %v3683_v51  ;;  %v4890_v58 = vadd.f32 %v4045_v25, %v3682_v49 }
 0x182   : > { %v4063_v59 = vadd.f32 %v3631_v56, %v3565_v8  ;;  %v4892_v60 = vadd.f32 %v4051_v30, %v3685_v57 }
 0x184   : > { %v3632_v61 = vpop.f32.mrb[24].mxu1  ;;  %v3686_v62 = vpop.f32.mrb[28].mxu0 }
 0x185   : > { %v3633_v63 = vpop.f32.mrb[25].mxu1  ;;  %v3687_v0 = vpop.f32.mrb[29].mxu0 }
 0x186   : > { %v3634_v2 = vadd.f32 %v3633_v63, %v3632_v61  ;;  %v3688_v3 = vadd.f32 %v3687_v0, %v3686_v62  ;;  %v3635_v4 = vpop.f32.mrb[26].mxu1  ;;  %v3689_v6 = vpop.f32.mrb[30].mxu0 }
 0x187   : > { %v3636_v7 = vpop.f32.mrb[27].mxu1  ;;  %v3690_v9 = vpop.f32.mrb[31].mxu0 }
 0x188   : > { %v4054_v10 = vadd.f32 %v3634_v2, %v3568_v11  ;;  %v3637_v12 = vadd.f32 %v3636_v7, %v3635_v4  ;;  %v3691_v5 = vadd.f32 %v3690_v9, %v3689_v6  ;;  %v4043_v13 = vadd.f32 %v4042_v33, %v3688_v3  ;;  %v4908_v4 = vld [vmem:[%s5225_s4] ss:$0 sm:$0xff] }
 0x18a   : > { %v4060_v15 = vadd.f32 %v3637_v12, %v3571_v14  ;;  %v4049_v1 = vadd.f32 %v4048_v44, %v3691_v5 }
 0x18c   : > { %v3638_v16 = vpop.f32.mrb[28].mxu1  ;;  %v3692_v8 = vpop.f32.mrb[32].mxu0 }
 0x18d   : > { %v3639_v17 = vpop.f32.mrb[29].mxu1  ;;  %v3693_v18 = vpop.f32.mrb[33].mxu0 }
 0x18e   : > { %v3640_v19 = vadd.f32 %v3639_v17, %v3638_v16  ;;  %v3694_v21 = vadd.f32 %v3693_v18, %v3692_v8  ;;  %v3641_v22 = vpop.f32.mrb[30].mxu1  ;;  %v3695_v24 = vpop.f32.mrb[34].mxu0 }
 0x18f   : > { %v3642_v25 = vpop.f32.mrb[31].mxu1  ;;  %v3696_v26 = vpop.f32.mrb[35].mxu0 }
 0x190   : > { %v4069_v30 = vadd.f32 %v3640_v19, %v4884_v20  ;;  %v3643_v31 = vadd.f32 %v3642_v25, %v3641_v22  ;;  %v3697_v32 = vadd.f32 %v3696_v26, %v3695_v24  ;;  %v4058_v11 = vadd.f32 %v4057_v54, %v3694_v21 }
 0x192   : > { %v4075_v34 = vadd.f32 %v3643_v31, %v3577_v29  ;;  %v4895_v35 = vadd.f32 %v4063_v59, %v3697_v32 }
 0x194   : > { %v3644_v14 = vpop.f32.mrb[32].mxu1  ;;  %v3698_v36 = vpop.f32.mrb[36].mxu0 }
 0x195   : > { %v3645_v38 = vpop.f32.mrb[33].mxu1  ;;  %v3699_v39 = vpop.f32.mrb[37].mxu0 }
 0x196   : > { %v3646_v40 = vadd.f32 %v3645_v38, %v3644_v14  ;;  %v3700_v41 = vadd.f32 %v3699_v39, %v3698_v36  ;;  %v3647_v33 = vpop.f32.mrb[34].mxu1  ;;  %v3701_v42 = vpop.f32.mrb[38].mxu0 }
 0x197   : > { %v3648_v44 = vpop.f32.mrb[35].mxu1  ;;  %v3702_v45 = vpop.f32.mrb[39].mxu0 }
 0x198   : > { %v4066_v47 = vadd.f32 %v3646_v40, %v4886_v28  ;;  %v3649_v37 = vadd.f32 %v3648_v44, %v3647_v33  ;;  %v3703_v20 = vadd.f32 %v3702_v45, %v3701_v42  ;;  %v4055_v46 = vadd.f32 %v4054_v10, %v3700_v41  ;;  %v2033_v45 = vld [vmem:[#allocation3 + $0x28] sm:$0xff] }
 0x19a   : > { %v4072_v48 = vadd.f32 %v3649_v37, %v4888_v43  ;;  %v4061_v29 = vadd.f32 %v4060_v15, %v3703_v20 }
 0x19c   : > { %v3704_v49 = vpop.f32.mrb[40].mxu0 }
 0x19d   : > { %v3705_v50 = vpop.f32.mrb[41].mxu0 }
 0x19e   : > { %v3706_v51 = vadd.f32 %v3705_v50, %v3704_v49  ;;  %v3707_v52 = vpop.f32.mrb[42].mxu0  ;;  %v2030_v49 = vld [vmem:[#allocation3 + $0x10] sm:$0xff] }
 0x19f   : > { %v3708_v53 = vpop.f32.mrb[43].mxu0 }
 0x1a0   : > { %v3709_v54 = vadd.f32 %v3708_v53, %v3707_v52  ;;  %v4899_v56 = vadd.f32 %v4069_v30, %v3706_v51 }
 0x1a2   : > { %v4901_v57 = vadd.f32 %v4075_v34, %v3709_v54 }
 0x1a4   : > { %v3710_v59 = vpop.f32.mrb[44].mxu0 }
 0x1a5   : > { %v3711_v61 = vpop.f32.mrb[45].mxu0 }
 0x1a6   : > { %v3712_v62 = vadd.f32 %v3711_v61, %v3710_v59  ;;  %v3713_v28 = vpop.f32.mrb[46].mxu0 }
 0x1a7   : > { %v3714_v63 = vpop.f32.mrb[47].mxu0 }
 0x1a8   : > { %v3715_v0 = vadd.f32 %v3714_v63, %v3713_v28  ;;  %v4067_v2 = vadd.f32 %v4066_v47, %v3712_v62 }
 0x1aa   : > { %v4903_v3 = vadd.f32 %v4072_v48, %v3715_v0 }
 0x1bc   : > { %v3960_v43 = vpop.f32.mrb[0].mxu1 }
 0x1bd   : > { %v4044_v6 = vadd.f32 %v4043_v13, %v3960_v43  ;;  %v1826_v7 = vpop.f32.mrb[1].mxu1 }
 0x1be   : > { %v4047_v9 = vadd.f32 %v4890_v58, %v1826_v7  ;;  %v3961_v10 = vpop.f32.mrb[2].mxu1 }
 0x1bf   : > { %v1894_v12 = vadd.f32 %v4044_v6, %v4908_v4  ;;  %v4050_v5 = vadd.f32 %v4049_v1, %v3961_v10  ;;  %v1829_v15 = vpop.f32.mrb[3].mxu1 }
 0x1c0   : > { %v1892_v16 = vadd.f32 %v4047_v9, %v4908_v4  ;;  %v4053_v8 = vadd.f32 %v4892_v60, %v1829_v15 }
 0x1c1   : > { %v1895_v17 = vadd.f32 %v4050_v5, %v4908_v4  ;;  %v1906_v19 = vmax.f32 %v1894_v12, 0.0 }
 0x1c2   : > { %v1893_v18 = vadd.f32 %v4053_v8, %v4908_v4  ;;  %v1904_v22 = vmax.f32 %v1892_v16, 0.0 }
 0x1c3   : > { %v1907_v21 = vmax.f32 %v1895_v17, 0.0 }
 0x1c4   : > { %v1905_v13 = vmax.f32 %v1893_v18, 0.0  ;;  %v3964_v24 = vpop.f32.mrb[4].mxu1 }
 0x1c5   : > { %v1917_v25 = vpack.c.bf16 %v1907_v21, %v1906_v19  ;;  %v4056_v58 = vadd.f32 %v4055_v46, %v3964_v24  ;;  %v1842_v26 = vpop.f32.mrb[5].mxu1  ;;  %v2039_v24 = vld [vmem:[#allocation3 + $0x58] sm:$0xff] }
 0x1c6   : > { %v1916_v30 = vpack.c.bf16 %v1905_v13, %v1904_v22  ;;  %v4059_v31 = vadd.f32 %v4058_v11, %v1842_v26  ;;  %v3965_v1 = vpop.f32.mrb[6].mxu1  ;;  %v1997_v11 = vld [vmem:[#allocation3 + $0x18] sm:$0xff]  ;;  %v2003_v13 = vld [vmem:[#allocation3 + $0x48] sm:$0xff] }
 0x1c7   : > { %1923 = vst [vmem:[#allocation3 + $0x20] sm:$0xff] %v1917_v25  ;;  %v1954_v32 = vshrl.u32 %v1917_v25, 16  ;;  %v1957_v34 = vshll.u32 %v1917_v25, 16  ;;  %v1898_v60 = vadd.f32 %v4056_v58, %v4908_v4  ;;  %v4062_v14 = vadd.f32 %v4061_v29, %v3965_v1  ;;  %v1845_v36 = vpop.f32.mrb[7].mxu1  ;;  %v1994_v29 = vld [vmem:[#allocation3] sm:$0xff] }
 0x1c8   : > { %1922 = vst [vmem:[#allocation3 + $0x8] sm:$0xff] %v1916_v30  ;;  %v1947_v38 = vshrl.u32 %v1916_v30, 16  ;;  %v1950_v39 = vshll.u32 %v1916_v30, 16  ;;  %v1896_v40 = vadd.f32 %v4059_v31, %v4908_v4  ;;  %v4065_v41 = vadd.f32 %v4895_v35, %v1845_v36  ;;  %v2000_v31 = vld [vmem:[#allocation3 + $0x30] sm:$0xff]  ;;  %v2036_v1 = vld [vmem:[#allocation3 + $0x40] sm:$0xff] }
 0x1c9   : > { %v1956_v33 = vrot.slane %v1954_v32, 7  ;;  %v2014_v42 = vrot.slane %v1957_v34, 1  ;;  %v1899_v44 = vadd.f32 %v4062_v14, %v4908_v4  ;;  %v1910_v50 = vmax.f32 %v1898_v60, 0.0  ;;  %2070 = vst [vmem:[#allocation3 + $0x8] sm:$0xff] (!%p3332_p12), %v4380_v23 }
 0x1ca   : > { %v1949_v47 = vrot.slane %v1947_v38, 7  ;;  %v2012_v37 = vrot.slane %v1950_v39, 1  ;;  %v1897_v20 = vadd.f32 %v4065_v41, %v4908_v4  ;;  %v1908_v54 = vmax.f32 %v1896_v40, 0.0 }
 0x1cb   : > { %v1959_v46 = vor.u32 %v1957_v34, %v1956_v33  ;;  %v2015_v48 = vor.u32 %v2014_v42, %v1954_v32  ;;  %v1911_v51 = vmax.f32 %v1899_v44, 0.0 }
 0x1cc   : > { %v1952_v52 = vor.u32 %v1950_v39, %v1949_v47  ;;  %v2013_v53 = vor.u32 %v2012_v37, %v1947_v38  ;;  %v1909_v35 = vmax.f32 %v1897_v20, 0.0  ;;  %v3968_v59 = vpop.f32.mrb[8].mxu1 }
 0x1cd   : > { %v1998_v61 = vsel %vm4497_vm7, %v1959_v46, %v1997_v11  ;;  %v2034_v62 = vsel %vm4491_vm6, %v2015_v48, %v2033_v45  ;;  %v1919_v28 = vpack.c.bf16 %v1911_v51, %v1910_v50  ;;  %v4068_v63 = vadd.f32 %v4067_v2, %v3968_v59  ;;  %v1858_v0 = vpop.f32.mrb[9].mxu1  ;;  %v2045_v50 = vld [vmem:[#allocation3 + $0x88] sm:$0xff]  ;;  %v2042_v59 = vld [vmem:[#allocation3 + $0x70] sm:$0xff] }
 0x1ce   : > { %1999 = vst [vmem:[#allocation3 + $0x18] sm:$0xff] %v1998_v61  ;;  %2035 = vst [vmem:[#allocation3 + $0x28] sm:$0xff] %v2034_v62  ;;  %v1995_v43 = vsel %vm4497_vm7, %v1952_v52, %v1994_v29  ;;  %v2031_v6 = vsel %vm4491_vm6, %v2013_v53, %v2030_v49  ;;  %v1918_v7 = vpack.c.bf16 %v1909_v35, %v1908_v54  ;;  %v3969_v10 = vpop.f32.mrb[10].mxu1  ;;  %v2009_v49 = vld [vmem:[#allocation3 + $0x78] sm:$0xff]  ;;  %v2006_v35 = vld [vmem:[#allocation3 + $0x60] sm:$0xff] }
 0x1cf   : > { %v4071_v9 = vadd.f32 %v4899_v56, %v1858_v0  ;;  %1996 = vst [vmem:[#allocation3] sm:$0xff] %v1995_v43  ;;  %2032 = vst [vmem:[#allocation3 + $0x10] sm:$0xff] %v2031_v6  ;;  %v1968_v12 = vshrl.u32 %v1919_v28, 16  ;;  %v1971_v5 = vshll.u32 %v1919_v28, 16  ;;  %v1902_v2 = vadd.f32 %v4068_v63, %v4908_v4  ;;  %v1861_v16 = vpop.f32.mrb[11].mxu1 }
 0x1d0   : > { %1925 = vst [vmem:[#allocation3 + $0x50] sm:$0xff] %v1919_v28  ;;  %v4074_v15 = vadd.f32 %v4903_v3, %v3969_v10  ;;  %1924 = vst [vmem:[#allocation3 + $0x38] sm:$0xff] %v1918_v7  ;;  %v1961_v8 = vshrl.u32 %v1918_v7, 16  ;;  %v1964_v17 = vshll.u32 %v1918_v7, 16  ;;  %v4077_v19 = vadd.f32 %v4901_v57, %v1861_v16 }
 0x1d1   : > { %v1900_v18 = vadd.f32 %v4071_v9, %v4908_v4  ;;  %v1970_v21 = vrot.slane %v1968_v12, 7  ;;  %v2018_v56 = vrot.slane %v1971_v5, 1  ;;  %v1914_v32 = vmax.f32 %v1902_v2, 0.0  ;;  %2069 = vst [vmem:[#allocation3] sm:$0xff] (!%p3332_p12), %v4380_v23 }
 0x1d2   : > { %v1903_v22 = vadd.f32 %v4074_v15, %v4908_v4  ;;  %v1963_v25 = vrot.slane %v1961_v8, 7  ;;  %v2016_v58 = vrot.slane %v1964_v17, 1  ;;  %v1901_v26 = vadd.f32 %v4077_v19, %v4908_v4 }
 0x1d3   : > { %v1973_v30 = vor.u32 %v1971_v5, %v1970_v21  ;;  %v2019_v3 = vor.u32 %v2018_v56, %v1968_v12  ;;  %v1912_v36 = vmax.f32 %v1900_v18, 0.0 }
 0x1d4   : > { %v1915_v34 = vmax.f32 %v1903_v22, 0.0  ;;  %v1966_v60 = vor.u32 %v1964_v17, %v1963_v25  ;;  %v2017_v14 = vor.u32 %v2016_v58, %v1961_v8  ;;  %v1913_v57 = vmax.f32 %v1901_v26, 0.0 }
 0x1d5   : > { %v2051_v38 = vld [vmem:[#allocation3 + $0x28] sm:$0x80]  ;;  %v2004_v39 = vsel %vm4497_vm7, %v1973_v30, %v2003_v13  ;;  %v2040_v40 = vsel %vm4491_vm6, %v2019_v3, %v2039_v24 }
 0x1d6   : > { %v1921_v41 = vpack.c.bf16 %v1915_v34, %v1914_v32  ;;  %v2052_v4 = vsel %vm4529_vm10, 0, %v2051_v38  ;;  %v2048_v33 = vld [vmem:[#allocation3 + $0x10] sm:$0x80]  ;;  %2005 = vst [vmem:[#allocation3 + $0x48] sm:$0xff] %v2004_v39  ;;  %2041 = vst [vmem:[#allocation3 + $0x58] sm:$0xff] %v2040_v40  ;;  %v2001_v42 = vsel %vm4497_vm7, %v1966_v60, %v2000_v31  ;;  %v2037_v44 = vsel %vm4491_vm6, %v2017_v14, %v2036_v1 }
 0x1d7   : > { %v1920_v11 = vpack.c.bf16 %v1913_v57, %v1912_v36  ;;  %2053 = vst [vmem:[#allocation3 + $0x28] sm:$0x80] %v2052_v4  ;;  %v2049_v45 = vsel %vm4529_vm10, 0, %v2048_v33  ;;  %2002 = vst [vmem:[#allocation3 + $0x30] sm:$0xff] %v2001_v42 }
 0x1d8   : > { %2038 = vst [vmem:[#allocation3 + $0x40] sm:$0xff] %v2037_v44  ;;  %1927 = vst [vmem:[#allocation3 + $0x80] sm:$0xff] %v1921_v41  ;;  %v1982_v47 = vshrl.u32 %v1921_v41, 16  ;;  %v1985_v37 = vshll.u32 %v1921_v41, 16 }
 0x1d9   : > { %2050 = vst [vmem:[#allocation3 + $0x10] sm:$0x80] %v2049_v45  ;;  %1926 = vst [vmem:[#allocation3 + $0x68] sm:$0xff] %v1920_v11  ;;  %v1975_v20 = vshrl.u32 %v1920_v11, 16  ;;  %v1978_v46 = vshll.u32 %v1920_v11, 16 }
 0x1da   : > { %v1984_v48 = vrot.slane %v1982_v47, 7  ;;  %v2022_v29 = vrot.slane %v1985_v37, 1  ;;  %2071 = vst [vmem:[#allocation3 + $0x10] sm:$0xff] (!%p3332_p12), %v4380_v23 }
 0x1db   : > { %v1977_v51 = vrot.slane %v1975_v20, 7  ;;  %v2020_v52 = vrot.slane %v1978_v46, 1 }
 0x1dc   : > { %v1987_v53 = vor.u32 %v1985_v37, %v1984_v48  ;;  %v2023_v54 = vor.u32 %v2022_v29, %v1982_v47 }
 0x1dd   : > { %v1980_v61 = vor.u32 %v1978_v46, %v1977_v51  ;;  %v2021_v62 = vor.u32 %v2020_v52, %v1975_v20  ;;  %v2057_v28 = vld [vmem:[#allocation3 + $0x58] sm:$0x80] }
 0x1de   : > { %v2010_v63 = vsel %vm4497_vm7, %v1987_v53, %v2009_v49  ;;  %v2046_v0 = vsel %vm4491_vm6, %v2023_v54, %v2045_v50  ;;  %v2058_v43 = vsel %vm4529_vm10, 0, %v2057_v28 }
 0x1df   : > { %v2054_v6 = vld [vmem:[#allocation3 + $0x40] sm:$0x80]  ;;  %2011 = vst [vmem:[#allocation3 + $0x78] sm:$0xff] %v2010_v63  ;;  %2047 = vst [vmem:[#allocation3 + $0x88] sm:$0xff] %v2046_v0  ;;  %v2007_v7 = vsel %vm4497_vm7, %v1980_v61, %v2006_v35  ;;  %v2043_v9 = vsel %vm4491_vm6, %v2021_v62, %v2042_v59 }
 0x1e0   : > { %2059 = vst [vmem:[#allocation3 + $0x58] sm:$0x80] %v2058_v43  ;;  %v2055_v10 = vsel %vm4529_vm10, 0, %v2054_v6  ;;  %2008 = vst [vmem:[#allocation3 + $0x60] sm:$0xff] %v2007_v7 }
 0x1e1   : > { %2044 = vst [vmem:[#allocation3 + $0x70] sm:$0xff] %v2043_v9  ;;  %2056 = vst [vmem:[#allocation3 + $0x40] sm:$0x80] %v2055_v10 }
 0x1e4   : > { %2068 = sbr.rel (%p3332_p12) target bundleno = 491 (0x1eb), region = 68 }
 0x1e6   : > { %v2063_v12 = vld [vmem:[#allocation3 + $0x88] sm:$0x80] }
 0x1e7   : > { %v2064_v5 = vsel %vm4529_vm10, 0, %v2063_v12 }
 0x1e8   : > { %v2060_v2 = vld [vmem:[#allocation3 + $0x70] sm:$0x80]  ;;  %2065 = vst [vmem:[#allocation3 + $0x88] sm:$0x80] %v2064_v5 }
 0x1e9   : > { %v2061_v27 = vsel %vm4529_vm10, 0, %v2060_v2 }
 0x1ea   : > { %2062 = vst [vmem:[#allocation3 + $0x70] sm:$0x80] %v2061_v27 }
 0x1eb PF: > { %2074 = sbr.rel (%p3336_p0) target bundleno = 498 (0x1f2), region = 72  ;;  %v4381_v15 = vmov (!%p3336_p0), 0  }
 0x1ec   : > { %2076 = vst [vmem:[#allocation3 + $0x78] sm:$0xff] (!%p3336_p0), %v4381_v15  ;;  %2077 = vst [vmem:[#allocation3 + $0x80] sm:$0xff] (!%p3336_p0), %v4381_v15 }
 0x1ed   : > { %2078 = vst [vmem:[#allocation3 + $0x88] sm:$0xff] (!%p3336_p0), %v4381_v15 }
 0x1f2 PF: > { %v4266_v55 = vld [vmem:[%s5226_s5 + $0x100] sm:$0xff]   ;;  %v4270_v18 = vld [vmem:[%s5226_s5 + $0x108] sm:$0xff]   ;;  %v4274_v22 = vld [vmem:[%s5226_s5 + $0x110] sm:$0xff]  }
 0x1f3   : > { %v4267_v16 = vld [vmem:[%s5226_s5 + $0x40] sm:$0xff]   ;;  %3730 = vmatprep.subr.bf16.mxu0 %v4266_v55  ;;  %v4271_v19 = vld [vmem:[%s5226_s5 + $0x48] sm:$0xff]   ;;  %v4275_v13 = vld [vmem:[%s5226_s5 + $0x50] sm:$0xff]  }
 0x1f4   : > { %v4268_v8 = vld [vmem:[%s5226_s5 + $0xc0] sm:$0xff]   ;;  %3782 = vmatprep.subr.bf16.mxu1 %v4267_v16  ;;  %v4272_v21 = vld [vmem:[%s5226_s5 + $0xc8] sm:$0xff]   ;;  %v4276_v24 = vld [vmem:[%s5226_s5 + $0xd0] sm:$0xff]  }
 0x1f5   : > { %v4269_v17 = vld [vmem:[%s5226_s5] sm:$0xff]   ;;  %3731 = vmatpush3.bf16.msra.mxu0 %v4268_v8  ;;  %v4273_v56 = vld [vmem:[%s5226_s5 + $0x8] sm:$0xff]   ;;  %v4277_v25 = vld [vmem:[%s5226_s5 + $0x10] sm:$0xff]  }
 0x1f6   : > { %3783 = vmatpush3.bf16.msra.mxu1 %v4269_v17  ;;  %3732 = vmatprep.subr.bf16.mxu0 %v4270_v18  ;;  %v4278_v58 = vld [vmem:[%s5226_s5 + $0x118] sm:$0xff]   ;;  %v4282_v31 = vld [vmem:[%s5226_s5 + $0x120] sm:$0xff]   ;;  %v4286_v60 = vld [vmem:[%s5226_s5 + $0x128] sm:$0xff]  }
 0x1f7   : > { %3784 = vmatprep.subr.bf16.mxu1 %v4271_v19  ;;  %v4279_v26 = vld [vmem:[%s5226_s5 + $0x58] sm:$0xff]   ;;  %v4283_v1 = vld [vmem:[%s5226_s5 + $0x60] sm:$0xff]   ;;  %v4287_v14 = vld [vmem:[%s5226_s5 + $0x68] sm:$0xff]  }
 0x1f8   : > { %v4280_v30 = vld [vmem:[%s5226_s5 + $0xd8] sm:$0xff]   ;;  %v4284_v32 = vld [vmem:[%s5226_s5 + $0xe0] sm:$0xff]   ;;  %v4288_v36 = vld [vmem:[%s5226_s5 + $0xe8] sm:$0xff]  }
 0x1f9   : > { %3733 = vmatpush3.bf16.msra.mxu0 %v4272_v21  ;;  %v4281_v3 = vld [vmem:[%s5226_s5 + $0x18] sm:$0xff]   ;;  %v4285_v34 = vld [vmem:[%s5226_s5 + $0x20] sm:$0xff]   ;;  %v4289_v57 = vld [vmem:[%s5226_s5 + $0x28] sm:$0xff]  }
 0x1fa   : > { %3785 = vmatpush3.bf16.msra.mxu1 %v4273_v56  ;;  %3734 = vmatprep.subr.bf16.mxu0 %v4274_v22  ;;  %v4290_v38 = vld [vmem:[%s5226_s5 + $0x130] sm:$0xff]   ;;  %v4294_v4 = vld [vmem:[%s5226_s5 + $0x138] sm:$0xff]   ;;  %v2141_v11 = vld [vmem:[#allocation3 + $0x20] sm:$0xff] }
 0x1fb   : > { %3786 = vmatprep.subr.bf16.mxu1 %v4275_v13  ;;  %v4291_v39 = vld [vmem:[%s5226_s5 + $0x70] sm:$0xff]   ;;  %v4295_v33 = vld [vmem:[%s5226_s5 + $0x78] sm:$0xff]   ;;  %v2080_v45 = vld [vmem:[#allocation3 + $0x8] sm:$0xff]  ;;  %2376 = vmatprep.mubr.bf16.mxu0 %v2141_v11 }
 0x1fc   : > { %v4292_v40 = vld [vmem:[%s5226_s5 + $0xf0] sm:$0xff]   ;;  %v4296_v42 = vld [vmem:[%s5226_s5 + $0xf8] sm:$0xff]   ;;  %v4298_v37 = vld [vmem:[%s5226_s5 + $0x140] sm:$0xff]   ;;  %2650 = vmatprep.mubr.bf16.mxu1 %v2080_v45 }
 0x1fd   : > { %3735 = vmatpush3.bf16.msra.mxu0 %v4276_v24  ;;  %v4293_v41 = vld [vmem:[%s5226_s5 + $0x30] sm:$0xff]   ;;  %v4297_v44 = vld [vmem:[%s5226_s5 + $0x38] sm:$0xff]   ;;  %v2079_v20 = vld [vmem:[#allocation3] sm:$0xff] }
 0x1fe   : > { %3787 = vmatpush3.bf16.msra.mxu1 %v4277_v25  ;;  %3736 = vmatprep.subr.bf16.mxu0 %v4278_v58  ;;  %v2140_v47 = vld [vmem:[#allocation3 + $0x18] sm:$0xff]  ;;  %v4299_v46 = vld [vmem:[%s5226_s5 + $0x1c0] sm:$0xff]   ;;  %v4301_v29 = vld [vmem:[%s5226_s5 + $0x148] sm:$0xff]  }
 0x1ff   : > { %3788 = vmatprep.subr.bf16.mxu1 %v4279_v26  ;;  %v4300_v48 = vld [vmem:[%s5226_s5 + $0x180] sm:$0xff]   ;;  %v4302_v49 = vld [vmem:[%s5226_s5 + $0x1c8] sm:$0xff]   ;;  %v2144_v51 = vld [vmem:[#allocation3 + $0x38] sm:$0xff] }
 0x200   : > { %v4303_v50 = vld [vmem:[%s5226_s5 + $0x188] sm:$0xff]   ;;  %v5082_v52 = vld [vmem:[#allocation3 + $0x30] sm:$0xff]  ;;  %v4307_v59 = vld [vmem:[%s5226_s5 + $0x158] sm:$0xff]  }
 0x201   : > { %3737 = vmatpush3.bf16.msra.mxu0 %v4280_v30  ;;  %v4304_v53 = vld [vmem:[%s5226_s5 + $0x150] sm:$0xff]   ;;  %v4308_v61 = vld [vmem:[%s5226_s5 + $0x1d8] sm:$0xff]   ;;  %v5103_v63 = vld [vmem:[#allocation3 + $0x48] sm:$0xff] }
 0x202   : > { %3789 = vmatpush3.bf16.msra.mxu1 %v4281_v3  ;;  %3738 = vmatprep.subr.bf16.mxu0 %v4282_v31  ;;  %v4305_v54 = vld [vmem:[%s5226_s5 + $0x1d0] sm:$0xff]   ;;  %v4309_v62 = vld [vmem:[%s5226_s5 + $0x198] sm:$0xff]   ;;  %v4310_v0 = vld [vmem:[%s5226_s5 + $0x160] sm:$0xff]  }
 0x203   : > { %3790 = vmatprep.subr.bf16.mxu1 %v4283_v1  ;;  %v4306_v35 = vld [vmem:[%s5226_s5 + $0x190] sm:$0xff]   ;;  %v4311_v43 = vld [vmem:[%s5226_s5 + $0x1e0] sm:$0xff]   ;;  %v4313_v7 = vld [vmem:[%s5226_s5 + $0x168] sm:$0xff]  }
 0x204   : > { %v2147_v28 = vld [vmem:[#allocation3 + $0x50] sm:$0xff]  ;;  %v4312_v6 = vld [vmem:[%s5226_s5 + $0x1a0] sm:$0xff]   ;;  %v4314_v9 = vld [vmem:[%s5226_s5 + $0x1e8] sm:$0xff]  }
 0x205   : > { %3739 = vmatpush3.bf16.msra.mxu0 %v4284_v32  ;;  %v2150_v10 = vld [vmem:[#allocation3 + $0x68] sm:$0xff]  ;;  %v4316_v5 = vld [vmem:[%s5226_s5 + $0x170] sm:$0xff]   ;;  %v2149_v27 = vld [vmem:[#allocation3 + $0x60] sm:$0xff] }
 0x206   : > { %3791 = vmatpush3.bf16.msra.mxu1 %v4285_v34  ;;  %3740 = vmatprep.subr.bf16.mxu0 %v4286_v60  ;;  %v4315_v12 = vld [vmem:[%s5226_s5 + $0x1a8] sm:$0xff]   ;;  %v4317_v2 = vld [vmem:[%s5226_s5 + $0x1f0] sm:$0xff]   ;;  %v4319_v23 = vld [vmem:[%s5226_s5 + $0x178] sm:$0xff]  }
 0x207   : > { %3792 = vmatprep.subr.bf16.mxu1 %v4287_v14  ;;  %v4318_v15 = vld [vmem:[%s5226_s5 + $0x1b0] sm:$0xff]   ;;  %v4320_v55 = vld [vmem:[%s5226_s5 + $0x1f8] sm:$0xff]   ;;  %v2142_v16 = vld [vmem:[#allocation3 + $0x28] sm:$0xff] }
 0x208   : > { %v4322_v8 = vld [vmem:[%s5226_s5 + $0x80] sm:$0xff]   ;;  %v4321_v17 = vld [vmem:[%s5226_s5 + $0x1b8] sm:$0xff]   ;;  %v4323_v19 = vld [vmem:[%s5226_s5 + $0x88] sm:$0xff]  }
 0x209   : > { %3741 = vmatpush3.bf16.msra.mxu0 %v4288_v36  ;;  %v2145_v18 = vld [vmem:[#allocation3 + $0x40] sm:$0xff]  ;;  %v5150_v21 = vld [vmem:[#allocation3 + $0x58] sm:$0xff]  ;;  %v4324_v56 = vld [vmem:[%s5226_s5 + $0x90] sm:$0xff]  }
 0x20a   : > { %3793 = vmatpush3.bf16.msra.mxu1 %v4289_v57  ;;  %3742 = vmatprep.subr.bf16.mxu0 %v4290_v38  ;;  %v4325_v22 = vld [vmem:[%s5226_s5 + $0x98] sm:$0xff]   ;;  %v2151_v13 = vld [vmem:[#allocation3 + $0x70] sm:$0xff]  ;;  %v4326_v25 = vld [vmem:[%s5226_s5 + $0xa0] sm:$0xff]  }
 0x20b   : > { %3794 = vmatprep.subr.bf16.mxu1 %v4291_v39  ;;  %v2081_v24 = vld [vmem:[#allocation3 + $0x10] sm:$0xff]  ;;  %v4327_v58 = vld [vmem:[%s5226_s5 + $0xa8] sm:$0xff]   ;;  %v2759_v26 = vld [vmem:[#allocation3 + $0x80] sm:$0xff] }
 0x20c   : > { %v4328_v30 = vld [vmem:[%s5226_s5 + $0xb0] sm:$0xff]   ;;  %v4329_v3 = vld [vmem:[%s5226_s5 + $0xb8] sm:$0xff]   ;;  %v4330_v1 = vld [vmem:[%s5226_s5 + $0x200] sm:$0xff]  }
 0x20d   : > { %3743 = vmatpush3.bf16.msra.mxu0 %v4292_v40  ;;  %v2758_v31 = vld [vmem:[#allocation3 + $0x78] sm:$0xff]  ;;  %v4331_v32 = vld [vmem:[%s5226_s5 + $0x208] sm:$0xff]   ;;  %v4332_v34 = vld [vmem:[%s5226_s5 + $0x210] sm:$0xff]  }
 0x20e   : > { %3795 = vmatpush3.bf16.msra.mxu1 %v4293_v41  ;;  %3744 = vmatprep.subr.bf16.mxu0 %v4294_v4  ;;  %v4333_v60 = vld [vmem:[%s5226_s5 + $0x218] sm:$0xff]   ;;  %v4334_v14 = vld [vmem:[%s5226_s5 + $0x220] sm:$0xff]   ;;  %v4335_v36 = vld [vmem:[%s5226_s5 + $0x228] sm:$0xff]  }
 0x20f   : > { %3796 = vmatprep.subr.bf16.mxu1 %v4295_v33  ;;  %v4336_v57 = vld [vmem:[%s5226_s5 + $0x230] sm:$0xff]   ;;  %v4337_v38 = vld [vmem:[%s5226_s5 + $0x238] sm:$0xff]   ;;  %v2760_v39 = vld [vmem:[#allocation3 + $0x88] sm:$0xff] }
 0x211   : > { %3745 = vmatpush3.bf16.msra.mxu0 %v4296_v42 }
 0x212   : > { %3797 = vmatpush3.bf16.msra.mxu1 %v4297_v44  ;;  %3970 = vmatprep.subr.bf16.mxu0 %v4298_v37 }
 0x213   : > { %3834 = vmatprep.subr.bf16.mxu1 %v4299_v46 }
 0x214   : > { %2377 = vmatmul.mubr.bf16.vlgmr.msra.gmra.mrb[48].mxu0 %v2140_v47 }
 0x215   : > { %2651 = vmatmul.mubr.bf16.vlgmr.msra.gmra.mrb[36].mxu1 %v2079_v20  ;;  %3971 = vmatpush3.bf16.msra.mxu0 %v4298_v37 }
 0x216   : > { %2658 = vmatprep.mubr.bf16.mxu1 %v2141_v11  ;;  %3835 = vmatpush3.bf16.msra.mxu1 %v4300_v48 }
 0x217   : > { %3972 = vmatprep.subr.bf16.mxu0 %v4301_v29  ;;  %3836 = vmatprep.subr.bf16.mxu1 %v4302_v49 }
 0x218   : > { %2384 = vmatprep.mubr.bf16.mxu0 %v2144_v51 }
 0x219   : > { %3973 = vmatpush3.bf16.msra.mxu0 %v4301_v29 }
 0x21a   : > { %3837 = vmatpush3.bf16.msra.mxu1 %v4303_v50  ;;  %3974 = vmatprep.subr.bf16.mxu0 %v4304_v53 }
 0x21b   : > { %3838 = vmatprep.subr.bf16.mxu1 %v4305_v54 }
 0x21c   : > { %2385 = vmatmul.mubr.bf16.gmra.mrb[52].mxu0 %v5082_v52 }
 0x21d   : > { %2659 = vmatmul.mubr.bf16.gmra.mrb[40].mxu1 %v2140_v47  ;;  %3975 = vmatpush3.bf16.msra.mxu0 %v4304_v53 }
 0x21e   : > { %3976 = vmatprep.subr.bf16.mxu0 %v4307_v59  ;;  %2666 = vmatprep.mubr.bf16.mxu1 %v2144_v51 }
 0x21f   : > { %3839 = vmatpush3.bf16.msra.mxu1 %v4306_v35  ;;  %2392 = vmatprep.mubr.bf16.mxu0 %v2147_v28 }
 0x220   : > { %3840 = vmatprep.subr.bf16.mxu1 %v4308_v61 }
 0x221   : > { %3977 = vmatpush3.bf16.msra.mxu0 %v4307_v59 }
 0x222   : > { %3978 = vmatprep.subr.bf16.mxu0 %v4310_v0 }
 0x223   : > { %3841 = vmatpush3.bf16.msra.mxu1 %v4309_v62 }
 0x224   : > { %2393 = vmatmul.mubr.bf16.gmra.mrb[56].mxu0 %v5103_v63  ;;  %3842 = vmatprep.subr.bf16.mxu1 %v4311_v43 }
 0x225   : > { %2667 = vmatmul.mubr.bf16.gmra.mrb[44].mxu1 %v5082_v52  ;;  %3979 = vmatpush3.bf16.msra.mxu0 %v4310_v0 }
 0x226   : > { %3980 = vmatprep.subr.bf16.mxu0 %v4313_v7  ;;  %2400 = vmatprep.mubr.bf16.mxu0 %v2150_v10 }
 0x227   : > { %3843 = vmatpush3.bf16.msra.mxu1 %v4312_v6  ;;  %2674 = vmatprep.mubr.bf16.mxu1 %v2147_v28 }
 0x228   : > { %3844 = vmatprep.subr.bf16.mxu1 %v4314_v9 }
 0x229   : > { %3981 = vmatpush3.bf16.msra.mxu0 %v4313_v7 }
 0x22a   : > { %3982 = vmatprep.subr.bf16.mxu0 %v4316_v5 }
 0x22b   : > { %3845 = vmatpush3.bf16.msra.mxu1 %v4315_v12 }
 0x22c   : > { %2401 = vmatmul.mubr.bf16.gmra.mrb[60].mxu0 %v2149_v27  ;;  %3846 = vmatprep.subr.bf16.mxu1 %v4317_v2 }
 0x22d   : > { %2675 = vmatmul.mubr.bf16.gmra.mrb[48].mxu1 %v5103_v63  ;;  %3983 = vmatpush3.bf16.msra.mxu0 %v4316_v5 }
 0x22e   : > { %3984 = vmatprep.subr.bf16.mxu0 %v4319_v23  ;;  %2985 = vmatprep.mubr.bf16.mxu1 %v2144_v51 }
 0x22f   : > { %3847 = vmatpush3.bf16.msra.mxu1 %v4318_v15  ;;  %3986 = vmatprep.mubr.bf16.mxu0 %v2142_v16 }
 0x230   : > { %3848 = vmatprep.subr.bf16.mxu1 %v4320_v55 }
 0x231   : > { %3985 = vmatpush3.bf16.msra.mxu0 %v4319_v23 }
 0x232   : > { %3994 = vmatprep.subr.bf16.mxu0 %v4322_v8 }
 0x233   : > { %3849 = vmatpush3.bf16.msra.mxu1 %v4321_v17 }
 0x234   : > { %3987 = vmatmul.mubr.bf16.vlgmr.msra.gmra.mrb[64].mxu0 %v2145_v18 }
 0x235   : > { %3995 = vmatpush3.bf16.msra.mxu0 %v4322_v8  ;;  %3990 = vmatprep.mubr.bf16.mxu0 %v5150_v21 }
 0x236   : > { %2986 = vmatmul.mubr.bf16.vlgmr.msra.gmra.mrb[52].mxu1 %v5082_v52  ;;  %3996 = vmatprep.subr.bf16.mxu0 %v4323_v19 }
 0x237   : > { %2993 = vmatprep.mubr.bf16.mxu1 %v2147_v28 }
 0x239   : > { %3997 = vmatpush3.bf16.msra.mxu0 %v4323_v19 }
 0x23a   : > { %3998 = vmatprep.subr.bf16.mxu0 %v4324_v56 }
 0x23c   : > { %3991 = vmatmul.mubr.bf16.gmra.mrb[68].mxu0 %v2151_v13 }
 0x23d   : > { %3999 = vmatpush3.bf16.msra.mxu0 %v4324_v56  ;;  %4010 = vmatprep.mubr.bf16.mxu0 %v2081_v24 }
 0x23e   : > { %2994 = vmatmul.mubr.bf16.gmra.mrb[56].mxu1 %v5103_v63  ;;  %4000 = vmatprep.subr.bf16.mxu0 %v4325_v22 }
 0x23f   : > { %3001 = vmatprep.mubr.bf16.mxu1 %v2150_v10 }
 0x241   : > { %4001 = vmatpush3.bf16.msra.mxu0 %v4325_v22 }
 0x242   : > { %4002 = vmatprep.subr.bf16.mxu0 %v4326_v25 }
 0x245   : > { %4003 = vmatpush3.bf16.msra.mxu0 %v4326_v25 }
 0x246   : > { %3002 = vmatmul.mubr.bf16.gmra.mrb[60].mxu1 %v2149_v27  ;;  %4004 = vmatprep.subr.bf16.mxu0 %v4327_v58 }
 0x247   : > { %3009 = vmatprep.mubr.bf16.mxu1 %v2759_v26 }
 0x249   : > { %4005 = vmatpush3.bf16.msra.mxu0 %v4327_v58 }
 0x24a   : > { %4006 = vmatprep.subr.bf16.mxu0 %v4328_v30 }
 0x24d   : > { %4007 = vmatpush3.bf16.msra.mxu0 %v4328_v30 }
 0x24e   : > { %3010 = vmatmul.mubr.bf16.gmra.mrb[64].mxu1 %v2758_v31  ;;  %4008 = vmatprep.subr.bf16.mxu0 %v4329_v3 }
 0x251   : > { %4009 = vmatpush3.bf16.msra.mxu0 %v4329_v3 }
 0x252   : > { %4018 = vmatprep.subr.bf16.mxu0 %v4330_v1 }
 0x254   : > { %4011 = vmatmul.mubr.bf16.vlgmr.msra.gmra.mrb[64].mxu0 %v2142_v16 }
 0x255   : > { %4019 = vmatpush3.bf16.msra.mxu0 %v4330_v1  ;;  %4014 = vmatprep.mubr.bf16.mxu0 %v2145_v18 }
 0x256   : > { %4020 = vmatprep.subr.bf16.mxu0 %v4331_v32 }
 0x259   : > { %4021 = vmatpush3.bf16.msra.mxu0 %v4331_v32 }
 0x25a   : > { %4022 = vmatprep.subr.bf16.mxu0 %v4332_v34 }
 0x25c   : > { %4015 = vmatmul.mubr.bf16.gmra.mrb[68].mxu0 %v5150_v21 }
 0x25d   : > { %4023 = vmatpush3.bf16.msra.mxu0 %v4332_v34  ;;  %4034 = vmatprep.mubr.bf16.mxu0 %v2145_v18 }
 0x25e   : > { %4024 = vmatprep.subr.bf16.mxu0 %v4333_v60 }
 0x261   : > { %4025 = vmatpush3.bf16.msra.mxu0 %v4333_v60 }
 0x262   : > { %4026 = vmatprep.subr.bf16.mxu0 %v4334_v14 }
 0x265   : > { %4027 = vmatpush3.bf16.msra.mxu0 %v4334_v14 }
 0x266   : > { %4028 = vmatprep.subr.bf16.mxu0 %v4335_v36 }
 0x269   : > { %4029 = vmatpush3.bf16.msra.mxu0 %v4335_v36 }
 0x26a   : > { %4030 = vmatprep.subr.bf16.mxu0 %v4336_v57 }
 0x26d   : > { %4031 = vmatpush3.bf16.msra.mxu0 %v4336_v57 }
 0x26e   : > { %4032 = vmatprep.subr.bf16.mxu0 %v4337_v38 }
 0x271   : > { %4033 = vmatpush3.bf16.msra.mxu0 %v4337_v38 }
 0x274   : > { %4035 = vmatmul.mubr.bf16.vlgmr.msra.gmra.mrb[64].mxu0 %v5150_v21 }
 0x275   : > { %4038 = vmatprep.mubr.bf16.mxu0 %v2151_v13 }
 0x27c   : > { %4039 = vmatmul.mubr.bf16.gmra.mrb[68].mxu0 %v2760_v39 }
 0x2e7   : > { %v3746_v40 = vpop.f32.mrb[48].mxu0 }
 0x2e8   : > { %v3798_v41 = vpop.f32.mrb[36].mxu1  ;;  %v3747_v4 = vpop.f32.mrb[49].mxu0 }
 0x2e9   : > { %v3748_v33 = vadd.f32 %v3747_v4, %v3746_v40  ;;  %v3799_v42 = vpop.f32.mrb[37].mxu1  ;;  %v3749_v44 = vpop.f32.mrb[50].mxu0 }
 0x2ea   : > { %v3800_v11 = vadd.f32 %v3799_v42, %v3798_v41  ;;  %v3801_v45 = vpop.f32.mrb[38].mxu1  ;;  %v3750_v47 = vpop.f32.mrb[51].mxu0 }
 0x2eb   : > { %v3751_v37 = vadd.f32 %v3750_v47, %v3749_v44  ;;  %v3802_v20 = vpop.f32.mrb[39].mxu1 }
 0x2ec   : > { %v4081_v46 = vadd.f32 %v3800_v11, %v3748_v33  ;;  %v3803_v48 = vadd.f32 %v3802_v20, %v3801_v45 }
 0x2ee   : > { %v4087_v29 = vadd.f32 %v3803_v48, %v3751_v37 }
 0x2ef   : > { %v3752_v49 = vpop.f32.mrb[52].mxu0 }
 0x2f0   : > { %v3804_v50 = vpop.f32.mrb[40].mxu1  ;;  %v3753_v51 = vpop.f32.mrb[53].mxu0 }
 0x2f1   : > { %v3754_v52 = vadd.f32 %v3753_v51, %v3752_v49  ;;  %v3805_v53 = vpop.f32.mrb[41].mxu1  ;;  %v3755_v54 = vpop.f32.mrb[54].mxu0 }
 0x2f2   : > { %v3806_v35 = vadd.f32 %v3805_v53, %v3804_v50  ;;  %v3807_v59 = vpop.f32.mrb[42].mxu1  ;;  %v3756_v61 = vpop.f32.mrb[55].mxu0 }
 0x2f3   : > { %v3757_v62 = vadd.f32 %v3756_v61, %v3755_v54  ;;  %v3808_v28 = vpop.f32.mrb[43].mxu1 }
 0x2f4   : > { %v4078_v63 = vadd.f32 %v3806_v35, %v3754_v52  ;;  %v3809_v0 = vadd.f32 %v3808_v28, %v3807_v59 }
 0x2f6   : > { %v4084_v43 = vadd.f32 %v3809_v0, %v3757_v62 }
 0x2f7   : > { %v3758_v6 = vpop.f32.mrb[56].mxu0 }
 0x2f8   : > { %v3810_v7 = vpop.f32.mrb[44].mxu1  ;;  %v3759_v9 = vpop.f32.mrb[57].mxu0 }
 0x2f9   : > { %v3760_v10 = vadd.f32 %v3759_v9, %v3758_v6  ;;  %v3811_v12 = vpop.f32.mrb[45].mxu1  ;;  %v3761_v5 = vpop.f32.mrb[58].mxu0 }
 0x2fa   : > { %v3812_v2 = vadd.f32 %v3811_v12, %v3810_v7  ;;  %v3813_v27 = vpop.f32.mrb[46].mxu1  ;;  %v3762_v23 = vpop.f32.mrb[59].mxu0 }
 0x2fb   : > { %v3763_v15 = vadd.f32 %v3762_v23, %v3761_v5  ;;  %v3814_v55 = vpop.f32.mrb[47].mxu1 }
 0x2fc   : > { %v4093_v16 = vadd.f32 %v3812_v2, %v3760_v10  ;;  %v3815_v8 = vadd.f32 %v3814_v55, %v3813_v27 }
 0x2fe   : > { %v4099_v17 = vadd.f32 %v3815_v8, %v3763_v15 }
 0x2ff   : > { %v3764_v18 = vpop.f32.mrb[60].mxu0 }
 0x300   : > { %v3816_v19 = vpop.f32.mrb[48].mxu1  ;;  %v3765_v21 = vpop.f32.mrb[61].mxu0 }
 0x301   : > { %v3766_v56 = vadd.f32 %v3765_v21, %v3764_v18  ;;  %v3817_v22 = vpop.f32.mrb[49].mxu1  ;;  %v3767_v13 = vpop.f32.mrb[62].mxu0 }
 0x302   : > { %v3818_v24 = vadd.f32 %v3817_v22, %v3816_v19  ;;  %v3819_v25 = vpop.f32.mrb[50].mxu1  ;;  %v3768_v58 = vpop.f32.mrb[63].mxu0 }
 0x303   : > { %v3769_v26 = vadd.f32 %v3768_v58, %v3767_v13  ;;  %v3820_v30 = vpop.f32.mrb[51].mxu1 }
 0x304   : > { %v4090_v3 = vadd.f32 %v3818_v24, %v3766_v56  ;;  %v3821_v31 = vadd.f32 %v3820_v30, %v3819_v25 }
 0x306   : > { %v4096_v1 = vadd.f32 %v3821_v31, %v3769_v26 }
 0x309   : > { %v3850_v32 = vpop.f32.mrb[52].mxu1 }
 0x30a   : > { %v3851_v34 = vpop.f32.mrb[53].mxu1 }
 0x30b   : > { %v3852_v60 = vadd.f32 %v3851_v34, %v3850_v32  ;;  %v3853_v14 = vpop.f32.mrb[54].mxu1 }
 0x30c   : > { %v3854_v36 = vpop.f32.mrb[55].mxu1 }
 0x30d   : > { %v3855_v57 = vadd.f32 %v3854_v36, %v3853_v14  ;;  %v4082_v38 = vadd.f32 %v4081_v46, %v3852_v60 }
 0x30f   : > { %v4088_v39 = vadd.f32 %v4087_v29, %v3855_v57 }
 0x311   : > { %v3856_v40 = vpop.f32.mrb[56].mxu1 }
 0x312   : > { %v3857_v41 = vpop.f32.mrb[57].mxu1 }
 0x313   : > { %v3858_v4 = vadd.f32 %v3857_v41, %v3856_v40  ;;  %v3859_v33 = vpop.f32.mrb[58].mxu1 }
 0x314   : > { %v3860_v42 = vpop.f32.mrb[59].mxu1 }
 0x315   : > { %v3861_v44 = vadd.f32 %v3860_v42, %v3859_v33  ;;  %v4079_v11 = vadd.f32 %v4078_v63, %v3858_v4  ;;  %v3484_v63 = vld [vmem:[%s5227_s6] ss:$0 sm:$0xff] }
 0x317   : > { %v4085_v45 = vadd.f32 %v4084_v43, %v3861_v44 }
 0x319   : > { %v3862_v47 = vpop.f32.mrb[60].mxu1 }
 0x31a   : > { %v3863_v37 = vpop.f32.mrb[61].mxu1 }
 0x31b   : > { %v3864_v20 = vadd.f32 %v3863_v37, %v3862_v47  ;;  %v3865_v48 = vpop.f32.mrb[62].mxu1 }
 0x31c   : > { %v3866_v49 = vpop.f32.mrb[63].mxu1 }
 0x31d   : > { %v3867_v50 = vadd.f32 %v3866_v49, %v3865_v48  ;;  %v4094_v51 = vadd.f32 %v4093_v16, %v3864_v20 }
 0x31f   : > { %v4100_v52 = vadd.f32 %v4099_v17, %v3867_v50 }
 0x321   : > { %v3868_v53 = vpop.f32.mrb[64].mxu1 }
 0x322   : > { %v3869_v54 = vpop.f32.mrb[65].mxu1 }
 0x323   : > { %v3870_v46 = vadd.f32 %v3869_v54, %v3868_v53  ;;  %v3871_v29 = vpop.f32.mrb[66].mxu1 }
 0x324   : > { %v3872_v35 = vpop.f32.mrb[67].mxu1 }
 0x325   : > { %v3873_v59 = vadd.f32 %v3872_v35, %v3871_v29  ;;  %v4091_v61 = vadd.f32 %v4090_v3, %v3870_v46 }
 0x327   : > { %v4097_v62 = vadd.f32 %v4096_v1, %v3873_v59 }
 0x347   : > { %v4036_v28 = vpop.f32.mrb[64].mxu0 }
 0x348   : > { %v4080_v0 = vadd.f32 %v4079_v11, %v4036_v28  ;;  %v3052_v43 = vpop.f32.mrb[65].mxu0 }
 0x349   : > { %v4083_v6 = vadd.f32 %v4082_v38, %v3052_v43  ;;  %v4037_v7 = vpop.f32.mrb[66].mxu0 }
 0x34a   : > { %v3100_v9 = vadd.f32 %v4080_v0, %v3484_v63  ;;  %v4086_v10 = vadd.f32 %v4085_v45, %v4037_v7  ;;  %v3055_v12 = vpop.f32.mrb[67].mxu0 }
 0x34b   : > { %v3098_v5 = vadd.f32 %v4083_v6, %v3484_v63  ;;  %v4089_v2 = vadd.f32 %v4088_v39, %v3055_v12 }
 0x34c   : > { %v3101_v27 = vadd.f32 %v4086_v10, %v3484_v63  ;;  %v3108_v15 = vmax.f32 %v3100_v9, 0.0 }
 0x34d   : > { %v3099_v23 = vadd.f32 %v4089_v2, %v3484_v63  ;;  %v3106_v16 = vmax.f32 %v3098_v5, 0.0 }
 0x34e   : > { %v3109_v55 = vmax.f32 %v3101_v27, 0.0 }
 0x34f   : > { %v3107_v8 = vmax.f32 %v3099_v23, 0.0  ;;  %v4040_v17 = vpop.f32.mrb[68].mxu0 }
 0x350   : > { %v3517_v18 = vpack.c.bf16 %v3109_v55, %v3108_v15  ;;  %v4092_v19 = vadd.f32 %v4091_v61, %v4040_v17  ;;  %v3068_v21 = vpop.f32.mrb[69].mxu0 }
 0x351   : > { %v3512_v56 = vpack.c.bf16 %v3107_v8, %v3106_v16  ;;  %v4095_v22 = vadd.f32 %v4094_v51, %v3068_v21  ;;  %v4041_v13 = vpop.f32.mrb[70].mxu0 }
 0x352   : > { %3529 = vst [vmem:[%s4481_s21 + $0x8] sm:$0xff] %v3517_v18   ;;  %v3104_v24 = vadd.f32 %v4092_v19, %v3484_v63  ;;  %v4098_v25 = vadd.f32 %v4097_v62, %v4041_v13  ;;  %v3071_v58 = vpop.f32.mrb[71].mxu0 }
 0x353   : > { %3513 = vst [vmem:[%s4481_s21] sm:$0xff] %v3512_v56   ;;  %v3102_v26 = vadd.f32 %v4095_v22, %v3484_v63  ;;  %v4101_v30 = vadd.f32 %v4100_v52, %v3071_v58 }
 0x354   : > { %v3105_v3 = vadd.f32 %v4098_v25, %v3484_v63  ;;  %v3112_v1 = vmax.f32 %v3104_v24, 0.0 }
 0x355   : > { %v3103_v31 = vadd.f32 %v4101_v30, %v3484_v63  ;;  %v3110_v34 = vmax.f32 %v3102_v26, 0.0 }
 0x356   : > { %v3113_v32 = vmax.f32 %v3105_v3, 0.0 }
 0x357   : > { %v3111_v60 = vmax.f32 %v3103_v31, 0.0 }
 0x358   : > { %v3527_v14 = vpack.c.bf16 %v3113_v32, %v3112_v1 }
 0x359   : > { %v3522_v36 = vpack.c.bf16 %v3111_v60, %v3110_v34 }
 0x35a   : > { %3531 = vst [vmem:[%s4481_s21 + $0x18] sm:$0xff] %v3527_v14  }
 0x35b   : > { %3530 = vst [vmem:[%s4481_s21 + $0x10] sm:$0xff] %v3522_v36  }
 0x35c PF: > { %s17_s28 = sadd.s32 1, %s4376_s28   ;;  %s5238_s24 = smov %s4368_s26 }
 0x35d   : > { %p14_p1 = scmp.ge.s32.totalorder %s17_s28, 10   ;;  %s5239_s25 = smov %s4372_s27 }
 0x35e   : > { %s5240_s26 = smov %s5243_s29  ;;  %s5241_s27 = smov %s5247_s30 }
 0x35f   :  { %16 = sbr.rel (!%p14_p1) target bundleno = 3 (0x3), region = 115 }

</bundles_post_ra>
